<compile_context>
chip_gen: v7x
topology: tpu7x:2x2x1
jax: 0.10.0
libtpu: 0.0.40
codegen_flags: <defaults>
</compile_context>

<pallas_src>
import functools

import numpy as np

import jax
import jax.numpy as jnp
from jax.experimental import pallas as pl
from jax.experimental.pallas import tpu as pltpu

NEG_SLOPE = 0.01  # nn.LeakyReLU default


def _leaky_relu(x):
    return jnp.where(x > 0, x, NEG_SLOPE * x)


def _conv_len(lin, k, s, p):
    return (lin + 2 * p - k) // s + 1


def _selectors(row_order, n_cols, col_of, k, s, pad, valid_len):
    """0/1 selector stack S of shape (k, len(row_order), n_cols).

    (S[kk] @ H)[r] == H[col_of(n_r, s*l_r + kk - pad)] for (n_r, l_r) =
    row_order[r], and an all-zero row whenever the window tap falls outside
    [0, valid_len) (this reproduces Conv1d zero padding, so the kernel needs
    no in-kernel padding, strided slicing or gathers).  Built with numpy from
    static shapes and baked as constants into the jitted graph.
    """
    sel = np.zeros((k, len(row_order), n_cols), np.float32)
    for kk in range(k):
        for r, (nn, lo) in enumerate(row_order):
            j = s * lo + kk - pad
            if 0 <= j < valid_len:
                sel[kk, r, col_of(nn, j)] = 1.0
    return jnp.asarray(sel)


def _full_spec(shape):
    # whole-array block (block == full array dims satisfies TPU tiling rules)
    nd = len(shape)
    return pl.BlockSpec(shape, lambda i, _nd=nd: (0,) * _nd)


# ------------------------------ fused kernel --------------------------------

def _cnn2_fused_kernel(x1_ref, w1_ref, b1_ref,
                       s2_ref, w2_ref, b2_ref,
                       s3_ref, w3_ref, b3_ref,
                       m1_ref, v1_ref, m2_ref, v2_ref,
                       m3_ref, v3_ref, m4_ref, v4_ref,
                       o_ref, *, n_batch):
    f32 = jnp.float32

    def mmf(a, b):  # f32-accumulating matmul (conv stack stays f32 for fidelity)
        return jnp.dot(a, b, preferred_element_type=f32)

    # ---- conv1: ONE batched matmul (N*L1, K1) @ (K1, C1) ----
    h = _leaky_relu(mmf(x1_ref[...], w1_ref[...]) + b1_ref[...])     # (N*L1, C1)

    # ---- maxpool1 (k=2, s=2): wrapper ordered rows even|odd -> pure VPU ----
    half = h.shape[0] // 2
    h = jnp.maximum(h[:half], h[half:])                               # (N*P1, C1)

    # ---- conv2 (k=4,s=2,p=2): im2col (4 selector dots + lane concat) then
    #      ONE stacked-weight matmul with contraction K2*C1 = 32 ----
    xcol = jnp.concatenate(
        [mmf(s2_ref[k], h) for k in range(s2_ref.shape[0])], axis=-1)  # (N*L2, K2*C1)
    h = _leaky_relu(mmf(xcol, w2_ref[...]) + b2_ref[...])             # (N*L2, C2), rows even|odd

    # ---- maxpool2 (k=4,s=2) = (k=2,s=2) pool then (k=2,s=1) pool, pure VPU.
    #      conv2's selector row order makes stage A a half split; conv3's
    #      selectors skip the one cross-sample row of stage B. ----
    half = h.shape[0] // 2
    ma = jnp.maximum(h[:half], h[half:])                              # (N*L2/2, C2)
    mb = jnp.maximum(ma[:-1], ma[1:])                                 # (N*L2/2 - 1, C2)

    # ---- conv3 (k=4,s=2,p=2): same im2col structure, contraction K3*C2 = 128 ----
    xcol = jnp.concatenate(
        [mmf(s3_ref[k], mb) for k in range(s3_ref.shape[0])], axis=-1)  # (L3*N, K3*C2)
    h = _leaky_relu(mmf(xcol, w3_ref[...]) + b3_ref[...])             # (L3*N, C3), l3-major rows

    # ---- maxpool3 (k=4,s=2 -> single window): max over the L3 row blocks.
    #      Result IS the MLP input (N, C3) -- no scratch, no masked stores. ----
    feat = h[:n_batch]
    for j in range(1, h.shape[0] // n_batch):
        feat = jnp.maximum(feat, h[j * n_batch:(j + 1) * n_batch])    # (N, C3)

    # ---- MLP: bf16 activations x bf16 weights on the MXU, f32 accumulation;
    #      bias add + LeakyReLU stay f32 on the VPU. ----
    def dense(v, w_ref_, b_ref_, act):
        y = jnp.dot(v.astype(jnp.bfloat16), w_ref_[...],
                    preferred_element_type=f32) + b_ref_[...]
        return _leaky_relu(y) if act else y

    z = dense(feat, m1_ref, v1_ref, True)      # (N, 1024)
    z = dense(z, m2_ref, v2_ref, True)         # (N, 256)
    z = dense(z, m3_ref, v3_ref, True)         # (N, 128)
    z = dense(z, m4_ref, v4_ref, False)        # (N, OUT_PAD)  lane-dense store
    o_ref[...] = z.astype(o_ref.dtype)


# -------------------------------- wrapper ------------------------------------

def cnn2_forward(x, params, in_num, out_num):
    (cw1, cb1), (cw2, cb2), (cw3, cb3) = params["conv"]
    (m1, v1), (m2, v2), (m3, v3), (m4, v4) = params["mlp"]

    n, cin, lin = x.shape
    assert cin == 1
    c1, _, k1 = cw1.shape          # (8, 1, 5)
    c2, _, k2 = cw2.shape          # (32, 8, 4)
    c3, _, k3 = cw3.shape          # (64, 32, 4)

    # static layer geometry (strides / pads fixed by the nn.Sequential)
    l1 = _conv_len(lin, k1, k1, 0)         # conv1: stride == kernel, pad 0
    p1 = _conv_len(l1, 2, 2, 0)            # pool1 (k=2, s=2)
    l2 = _conv_len(p1, k2, 2, 2)           # conv2
    p2 = _conv_len(l2, 4, 2, 0)            # pool2 (k=4, s=2)
    l3 = _conv_len(p2, k3, 2, 2)           # conv3
    p3 = _conv_len(l3, 4, 2, 0)            # pool3 (k=4, s=2)
    assert p3 == 1 and c3 * p3 == in_num, (
        "x.view(-1, in_num) requires the conv stack to emit (N, in_num, 1)")
    assert l1 % 2 == 0 and l2 % 2 == 0 and l3 == 4, (
        "pool decompositions assume even conv1/conv2 lengths and conv3 len 4")

    # conv1 input: non-overlapping windows (kernel == stride) via a free
    # reshape; rows permuted even|odd so in-kernel pool1 is a half-split max.
    xr = x[:, 0, :l1 * k1].reshape(n, l1, k1)
    x1 = jnp.concatenate([xr[:, 0::2, :].reshape(n * p1, k1),
                          xr[:, 1::2, :].reshape(n * p1, k1)], axis=0)  # (N*L1, K1)

    # per-layer weights in matmul form (all tiny, VMEM-resident)
    w1m = cw1.reshape(c1, k1).T                              # (K1, C1)
    w2s = jnp.transpose(cw2, (2, 1, 0)).reshape(k2 * c1, c2)  # (K2*C1, C2)
    w3s = jnp.transpose(cw3, (2, 1, 0)).reshape(k3 * c2, c3)  # (K3*C2, C3)

    # conv2 selectors: output rows ordered (even l2 block | odd l2 block) so
    # pool2 stage A is a contiguous half-split inside the kernel.
    half2 = l2 // 2
    row2 = ([(nn, 2 * q) for nn in range(n) for q in range(half2)]
            + [(nn, 2 * q + 1) for nn in range(n) for q in range(half2)])
    s2 = _selectors(row2, n * p1, lambda nn, j: nn * p1 + j, k2, 2, 2, p1)

    # conv3 selectors: read the (N*half2 - 1)-row pool2 stage-B array, skipping
    # its single cross-sample row; output rows l3-major so pool3 is a max over
    # contiguous N-row blocks (which is exactly the MLP input).
    row3 = [(nn, ll) for ll in range(l3) for nn in range(n)]
    s3 = _selectors(row3, n * half2 - 1, lambda nn, j: nn * half2 + j, k3, 2, 2, p2)

    # lane-pad the final layer so the single output store is 128-lane dense
    out_pad = max(128, pl.cdiv(out_num, 128) * 128)
    m4p = jnp.pad(m4, ((0, 0), (0, out_pad - out_num)))
    v4p = jnp.pad(v4.reshape(1, -1), ((0, 0), (0, out_pad - out_num)))

    args = [x1, w1m, cb1.reshape(1, -1),
            s2, w2s, cb2.reshape(1, -1),
            s3, w3s, cb3.reshape(1, -1),
            m1, v1.reshape(1, -1), m2, v2.reshape(1, -1),
            m3, v3.reshape(1, -1), m4p, v4p]

    # Single fused step; everything fits VMEM on v5e/v6e/v7x.  If N grows,
    # promote batch to a leading "parallel" grid axis (v7x: 2 TensorCores) and
    # replicate the weight specs via index_map -> 0.
    out = pl.pallas_call(
        functools.partial(_cnn2_fused_kernel, n_batch=n),
        out_shape=jax.ShapeDtypeStruct((n, out_pad), jnp.float32),
        grid=(1,),
        in_specs=[_full_spec(a.shape) for a in args],
        out_specs=_full_spec((n, out_pad)),
        compiler_params=pltpu.CompilerParams(
            dimension_semantics=("arbitrary",),
            vmem_limit_bytes=32 * 1024 * 1024),
    )(*args)

    return out[:, :out_num].reshape(-1, out_num)   # x.view(-1, out_num)


# --------------------------- pure-JAX reference -----------------------------

def cnn2_reference(x, params, in_num, out_num):
    (cw1, cb1), (cw2, cb2), (cw3, cb3) = params["conv"]

    def conv(h, w, b, s, p):
        y = jax.lax.conv_general_dilated(
            h, w, window_strides=(s,), padding=[(p, p)],
            dimension_numbers=("NCH", "OIH", "NCH"))
        return _leaky_relu(y + b[None, :, None])

    def pool(h, k, s):
        return jax.lax.reduce_window(h, -jnp.inf, jax.lax.max,
                                     (1, 1, k), (1, 1, s), "VALID")

    h = pool(conv(x, cw1, cb1, 5, 0), 2, 2)
    h = pool(conv(h, cw2, cb2, 2, 2), 4, 2)
    h = pool(conv(h, cw3, cb3, 2, 2), 4, 2)
    h = h.reshape(-1, in_num)

    (w1, b1), (w2, b2), (w3, b3), (w4, b4) = params["mlp"]

    def dense(v, w, b, act=True):
        # identical compute dtype to the kernel: bf16 x bf16 dot, f32 accumulate
        y = jnp.dot(v.astype(jnp.bfloat16), w,
                    preferred_element_type=jnp.float32) + b
        return _leaky_relu(y) if act else y

    h = dense(h, w1, b1)
    h = dense(h, w2, b2)
    h = dense(h, w3, b3)
    h = dense(h, w4, b4, act=False)
    return h.reshape(-1, out_num)


# ------------------------------ param init ----------------------------------

def _uniform(key, shape, fan_in):
    bound = 1.0 / (fan_in ** 0.5)
    return jax.random.uniform(key, shape, jnp.float32, -bound, bound)


def init_params(key, in_num, out_num):
    ks = jax.random.split(key, 14)
    conv = [
        (_uniform(ks[0], (8, 1, 5), 1 * 5),    _uniform(ks[1], (8,), 1 * 5)),
        (_uniform(ks[2], (32, 8, 4), 8 * 4),   _uniform(ks[3], (32,), 8 * 4)),
        (_uniform(ks[4], (64, 32, 4), 32 * 4), _uniform(ks[5], (64,), 32 * 4)),
    ]
    # MLP weight matrices stored in bf16 (halves the dominant weight traffic);
    # biases and accumulation stay f32.
    mlp = [
        (_uniform(ks[6], (in_num, 1024), in_num).astype(jnp.bfloat16),
         _uniform(ks[7], (1024,), in_num)),
        (_uniform(ks[8], (1024, 256), 1024).astype(jnp.bfloat16),
         _uniform(ks[9], (256,), 1024)),
        (_uniform(ks[10], (256, 128), 256).astype(jnp.bfloat16),
         _uniform(ks[11], (128,), 256)),
        (_uniform(ks[12], (128, out_num), 128).astype(jnp.bfloat16),
         _uniform(ks[13], (out_num,), 128)),
    ]
    return {"conv": conv, "mlp": mlp}


# --------------------------------- main --------------------------------------

if __name__ == "__main__":
    # With L=260: conv stack -> (N, 64, 1), so in_num = 64.
    N, L = 2, 260
    IN_NUM, OUT_NUM = 64, 4

    key = jax.random.PRNGKey(0)
    kx, kp = jax.random.split(key)
    x = jax.random.normal(kx, (N, 1, L), jnp.float32)       # NCL, like PyTorch Conv1d
    params = init_params(kp, IN_NUM, OUT_NUM)

    fwd = jax.jit(functools.partial(cnn2_forward, in_num=IN_NUM, out_num=OUT_NUM))
    out = jax.block_until_ready(fwd(x, params))

    ref = cnn2_reference(x, params, IN_NUM, OUT_NUM)
    assert out.shape == (N, OUT_NUM), out.shape
    assert jnp.allclose(out, ref, rtol=1e-3, atol=1e-3), "mismatch vs reference"
    print("KERNEL_OK")
</pallas_src>

<mosaic_0001>
module attributes {stable_mosaic.version = 11 : i64} {
  func.func @_cnn2_fused_kernel(%arg0: i32, %arg1: memref<104x5xf32, #tpu.memory_space<vmem>>, %arg2: memref<5x8xf32, #tpu.memory_space<vmem>>, %arg3: memref<1x8xf32, #tpu.memory_space<vmem>>, %arg4: memref<4x28x52xf32, #tpu.memory_space<vmem>>, %arg5: memref<32x32xf32, #tpu.memory_space<vmem>>, %arg6: memref<1x32xf32, #tpu.memory_space<vmem>>, %arg7: memref<4x8x13xf32, #tpu.memory_space<vmem>>, %arg8: memref<128x64xf32, #tpu.memory_space<vmem>>, %arg9: memref<1x64xf32, #tpu.memory_space<vmem>>, %arg10: memref<64x1024xbf16, #tpu.memory_space<vmem>>, %arg11: memref<1x1024xf32, #tpu.memory_space<vmem>>, %arg12: memref<1024x256xbf16, #tpu.memory_space<vmem>>, %arg13: memref<1x256xf32, #tpu.memory_space<vmem>>, %arg14: memref<256x128xbf16, #tpu.memory_space<vmem>>, %arg15: memref<1x128xf32, #tpu.memory_space<vmem>>, %arg16: memref<128x128xbf16, #tpu.memory_space<vmem>>, %arg17: memref<1x128xf32, #tpu.memory_space<vmem>>, %arg18: memref<2x128xf32, #tpu.memory_space<vmem>>) attributes {dimension_semantics = [#tpu.dimension_semantics<arbitrary>], iteration_bounds = array<i64: 1>, scalar_prefetch = 0 : i64, scratch_operands = 0 : i64, tpu.core_type = #tpu.core_type<tc>, window_params = [{pipeline_mode = #tpu.pipeline_mode<synchronous>, transform_indices = @transform_0, window_bounds = array<i64: 104, 5>}, {pipeline_mode = #tpu.pipeline_mode<synchronous>, transform_indices = @transform_1, window_bounds = array<i64: 5, 8>}, {pipeline_mode = #tpu.pipeline_mode<synchronous>, transform_indices = @transform_2, window_bounds = array<i64: 1, 8>}, {pipeline_mode = #tpu.pipeline_mode<synchronous>, transform_indices = @transform_3, window_bounds = array<i64: 4, 28, 52>}, {pipeline_mode = #tpu.pipeline_mode<synchronous>, transform_indices = @transform_4, window_bounds = array<i64: 32, 32>}, {pipeline_mode = #tpu.pipeline_mode<synchronous>, transform_indices = @transform_5, window_bounds = array<i64: 1, 32>}, {pipeline_mode = #tpu.pipeline_mode<synchronous>, transform_indices = @transform_6, window_bounds = array<i64: 4, 8, 13>}, {pipeline_mode = #tpu.pipeline_mode<synchronous>, transform_indices = @transform_7, window_bounds = array<i64: 128, 64>}, {pipeline_mode = #tpu.pipeline_mode<synchronous>, transform_indices = @transform_8, window_bounds = array<i64: 1, 64>}, {pipeline_mode = #tpu.pipeline_mode<synchronous>, transform_indices = @transform_9, window_bounds = array<i64: 64, 1024>}, {pipeline_mode = #tpu.pipeline_mode<synchronous>, transform_indices = @transform_10, window_bounds = array<i64: 1, 1024>}, {pipeline_mode = #tpu.pipeline_mode<synchronous>, transform_indices = @transform_11, window_bounds = array<i64: 1024, 256>}, {pipeline_mode = #tpu.pipeline_mode<synchronous>, transform_indices = @transform_12, window_bounds = array<i64: 1, 256>}, {pipeline_mode = #tpu.pipeline_mode<synchronous>, transform_indices = @transform_13, window_bounds = array<i64: 256, 128>}, {pipeline_mode = #tpu.pipeline_mode<synchronous>, transform_indices = @transform_14, window_bounds = array<i64: 1, 128>}, {pipeline_mode = #tpu.pipeline_mode<synchronous>, transform_indices = @transform_15, window_bounds = array<i64: 128, 128>}, {pipeline_mode = #tpu.pipeline_mode<synchronous>, transform_indices = @transform_16, window_bounds = array<i64: 1, 128>}, {pipeline_mode = #tpu.pipeline_mode<synchronous>, transform_indices = @transform_17, window_bounds = array<i64: 2, 128>}]} {
    %c0 = arith.constant 0 : index
    %c0_0 = arith.constant 0 : index
    %0 = vector.load %arg1[%c0, %c0_0] : memref<104x5xf32, #tpu.memory_space<vmem>>, vector<104x5xf32>
    %c0_1 = arith.constant 0 : index
    %c0_2 = arith.constant 0 : index
    %1 = vector.load %arg2[%c0_1, %c0_2] : memref<5x8xf32, #tpu.memory_space<vmem>>, vector<5x8xf32>
    %cst = arith.constant dense<0.000000e+00> : vector<104x8xf32>
    %2 = tpu.matmul %0, %1, %cst {dimension_numbers = #tpu.dot_dimension_numbers<[1], [0], [0], [1], [0, 0, 1, 1], [], []>} : vector<104x5xf32>, vector<5x8xf32>, vector<104x8xf32> -> vector<104x8xf32>
    %c0_3 = arith.constant 0 : index
    %c0_4 = arith.constant 0 : index
    %3 = vector.load %arg3[%c0_3, %c0_4] : memref<1x8xf32, #tpu.memory_space<vmem>>, vector<1x8xf32>
    %4 = vector.broadcast %3 : vector<1x8xf32> to vector<104x8xf32>
    %5 = arith.addf %2, %4 : vector<104x8xf32>
    %cst_5 = arith.constant 0.000000e+00 : f32
    %6 = vector.broadcast %cst_5 : f32 to vector<104x8xf32>
    %7 = arith.cmpf ogt, %5, %6 : vector<104x8xf32>
    %cst_6 = arith.constant 0.00999999977 : f32
    %8 = vector.broadcast %cst_6 : f32 to vector<104x8xf32>
    %9 = arith.mulf %8, %5 : vector<104x8xf32>
    %10 = arith.select %7, %5, %9 : vector<104x8xi1>, vector<104x8xf32>
    %11 = vector.extract_strided_slice %10 {offsets = [0, 0], sizes = [52, 8], strides = [1, 1]} : vector<104x8xf32> to vector<52x8xf32>
    %12 = vector.extract_strided_slice %10 {offsets = [52, 0], sizes = [52, 8], strides = [1, 1]} : vector<104x8xf32> to vector<52x8xf32>
    %13 = arith.maximumf %11, %12 : vector<52x8xf32>
    %c0_7 = arith.constant 0 : index
    %c0_8 = arith.constant 0 : index
    %c0_9 = arith.constant 0 : index
    %14 = vector.load %arg4[%c0_7, %c0_8, %c0_9] : memref<4x28x52xf32, #tpu.memory_space<vmem>>, vector<1x28x52xf32>
    %15 = vector.shape_cast %14 : vector<1x28x52xf32> to vector<28x52xf32>
    %cst_10 = arith.constant dense<0.000000e+00> : vector<28x8xf32>
    %16 = tpu.matmul %15, %13, %cst_10 {dimension_numbers = #tpu.dot_dimension_numbers<[1], [0], [0], [1], [0, 0, 1, 1], [], []>} : vector<28x52xf32>, vector<52x8xf32>, vector<28x8xf32> -> vector<28x8xf32>
    %c1 = arith.constant 1 : index
    %c0_11 = arith.constant 0 : index
    %c0_12 = arith.constant 0 : index
    %17 = vector.load %arg4[%c1, %c0_11, %c0_12] : memref<4x28x52xf32, #tpu.memory_space<vmem>>, vector<1x28x52xf32>
    %18 = vector.shape_cast %17 : vector<1x28x52xf32> to vector<28x52xf32>
    %cst_13 = arith.constant dense<0.000000e+00> : vector<28x8xf32>
    %19 = tpu.matmul %18, %13, %cst_13 {dimension_numbers = #tpu.dot_dimension_numbers<[1], [0], [0], [1], [0, 0, 1, 1], [], []>} : vector<28x52xf32>, vector<52x8xf32>, vector<28x8xf32> -> vector<28x8xf32>
    %c2 = arith.constant 2 : index
    %c0_14 = arith.constant 0 : index
    %c0_15 = arith.constant 0 : index
    %20 = vector.load %arg4[%c2, %c0_14, %c0_15] : memref<4x28x52xf32, #tpu.memory_space<vmem>>, vector<1x28x52xf32>
    %21 = vector.shape_cast %20 : vector<1x28x52xf32> to vector<28x52xf32>
    %cst_16 = arith.constant dense<0.000000e+00> : vector<28x8xf32>
    %22 = tpu.matmul %21, %13, %cst_16 {dimension_numbers = #tpu.dot_dimension_numbers<[1], [0], [0], [1], [0, 0, 1, 1], [], []>} : vector<28x52xf32>, vector<52x8xf32>, vector<28x8xf32> -> vector<28x8xf32>
    %c3 = arith.constant 3 : index
    %c0_17 = arith.constant 0 : index
    %c0_18 = arith.constant 0 : index
    %23 = vector.load %arg4[%c3, %c0_17, %c0_18] : memref<4x28x52xf32, #tpu.memory_space<vmem>>, vector<1x28x52xf32>
    %24 = vector.shape_cast %23 : vector<1x28x52xf32> to vector<28x52xf32>
    %cst_19 = arith.constant dense<0.000000e+00> : vector<28x8xf32>
    %25 = tpu.matmul %24, %13, %cst_19 {dimension_numbers = #tpu.dot_dimension_numbers<[1], [0], [0], [1], [0, 0, 1, 1], [], []>} : vector<28x52xf32>, vector<52x8xf32>, vector<28x8xf32> -> vector<28x8xf32>
    %26 = tpu.concatenate %16, %19, %22, %25 in 1 : vector<28x8xf32>, vector<28x8xf32>, vector<28x8xf32>, vector<28x8xf32> -> vector<28x32xf32>
    %c0_20 = arith.constant 0 : index
    %c0_21 = arith.constant 0 : index
    %27 = vector.load %arg5[%c0_20, %c0_21] : memref<32x32xf32, #tpu.memory_space<vmem>>, vector<32x32xf32>
    %cst_22 = arith.constant dense<0.000000e+00> : vector<28x32xf32>
    %28 = tpu.matmul %26, %27, %cst_22 {dimension_numbers = #tpu.dot_dimension_numbers<[1], [0], [0], [1], [0, 0, 1, 1], [], []>} : vector<28x32xf32>, vector<32x32xf32>, vector<28x32xf32> -> vector<28x32xf32>
    %c0_23 = arith.constant 0 : index
    %c0_24 = arith.constant 0 : index
    %29 = vector.load %arg6[%c0_23, %c0_24] : memref<1x32xf32, #tpu.memory_space<vmem>>, vector<1x32xf32>
    %30 = vector.broadcast %29 : vector<1x32xf32> to vector<28x32xf32>
    %31 = arith.addf %28, %30 : vector<28x32xf32>
    %cst_25 = arith.constant 0.000000e+00 : f32
    %32 = vector.broadcast %cst_25 : f32 to vector<28x32xf32>
    %33 = arith.cmpf ogt, %31, %32 : vector<28x32xf32>
    %cst_26 = arith.constant 0.00999999977 : f32
    %34 = vector.broadcast %cst_26 : f32 to vector<28x32xf32>
    %35 = arith.mulf %34, %31 : vector<28x32xf32>
    %36 = arith.select %33, %31, %35 : vector<28x32xi1>, vector<28x32xf32>
    %37 = vector.extract_strided_slice %36 {offsets = [0, 0], sizes = [14, 32], strides = [1, 1]} : vector<28x32xf32> to vector<14x32xf32>
    %38 = vector.extract_strided_slice %36 {offsets = [14, 0], sizes = [14, 32], strides = [1, 1]} : vector<28x32xf32> to vector<14x32xf32>
    %39 = arith.maximumf %37, %38 : vector<14x32xf32>
    %40 = vector.extract_strided_slice %39 {offsets = [0, 0], sizes = [13, 32], strides = [1, 1]} : vector<14x32xf32> to vector<13x32xf32>
    %41 = vector.extract_strided_slice %39 {offsets = [1, 0], sizes = [13, 32], strides = [1, 1]} : vector<14x32xf32> to vector<13x32xf32>
    %42 = arith.maximumf %40, %41 : vector<13x32xf32>
    %c0_27 = arith.constant 0 : index
    %c0_28 = arith.constant 0 : index
    %c0_29 = arith.constant 0 : index
    %43 = vector.load %arg7[%c0_27, %c0_28, %c0_29] : memref<4x8x13xf32, #tpu.memory_space<vmem>>, vector<1x8x13xf32>
    %44 = vector.shape_cast %43 : vector<1x8x13xf32> to vector<8x13xf32>
    %cst_30 = arith.constant dense<0.000000e+00> : vector<8x32xf32>
    %45 = tpu.matmul %44, %42, %cst_30 {dimension_numbers = #tpu.dot_dimension_numbers<[1], [0], [0], [1], [0, 0, 1, 1], [], []>} : vector<8x13xf32>, vector<13x32xf32>, vector<8x32xf32> -> vector<8x32xf32>
    %c1_31 = arith.constant 1 : index
    %c0_32 = arith.constant 0 : index
    %c0_33 = arith.constant 0 : index
    %46 = vector.load %arg7[%c1_31, %c0_32, %c0_33] : memref<4x8x13xf32, #tpu.memory_space<vmem>>, vector<1x8x13xf32>
    %47 = vector.shape_cast %46 : vector<1x8x13xf32> to vector<8x13xf32>
    %cst_34 = arith.constant dense<0.000000e+00> : vector<8x32xf32>
    %48 = tpu.matmul %47, %42, %cst_34 {dimension_numbers = #tpu.dot_dimension_numbers<[1], [0], [0], [1], [0, 0, 1, 1], [], []>} : vector<8x13xf32>, vector<13x32xf32>, vector<8x32xf32> -> vector<8x32xf32>
    %c2_35 = arith.constant 2 : index
    %c0_36 = arith.constant 0 : index
    %c0_37 = arith.constant 0 : index
    %49 = vector.load %arg7[%c2_35, %c0_36, %c0_37] : memref<4x8x13xf32, #tpu.memory_space<vmem>>, vector<1x8x13xf32>
    %50 = vector.shape_cast %49 : vector<1x8x13xf32> to vector<8x13xf32>
    %cst_38 = arith.constant dense<0.000000e+00> : vector<8x32xf32>
    %51 = tpu.matmul %50, %42, %cst_38 {dimension_numbers = #tpu.dot_dimension_numbers<[1], [0], [0], [1], [0, 0, 1, 1], [], []>} : vector<8x13xf32>, vector<13x32xf32>, vector<8x32xf32> -> vector<8x32xf32>
    %c3_39 = arith.constant 3 : index
    %c0_40 = arith.constant 0 : index
    %c0_41 = arith.constant 0 : index
    %52 = vector.load %arg7[%c3_39, %c0_40, %c0_41] : memref<4x8x13xf32, #tpu.memory_space<vmem>>, vector<1x8x13xf32>
    %53 = vector.shape_cast %52 : vector<1x8x13xf32> to vector<8x13xf32>
    %cst_42 = arith.constant dense<0.000000e+00> : vector<8x32xf32>
    %54 = tpu.matmul %53, %42, %cst_42 {dimension_numbers = #tpu.dot_dimension_numbers<[1], [0], [0], [1], [0, 0, 1, 1], [], []>} : vector<8x13xf32>, vector<13x32xf32>, vector<8x32xf32> -> vector<8x32xf32>
    %55 = tpu.concatenate %45, %48, %51, %54 in 1 : vector<8x32xf32>, vector<8x32xf32>, vector<8x32xf32>, vector<8x32xf32> -> vector<8x128xf32>
    %c0_43 = arith.constant 0 : index
    %c0_44 = arith.constant 0 : index
    %56 = vector.load %arg8[%c0_43, %c0_44] : memref<128x64xf32, #tpu.memory_space<vmem>>, vector<128x64xf32>
    %cst_45 = arith.constant dense<0.000000e+00> : vector<8x64xf32>
    %57 = tpu.matmul %55, %56, %cst_45 {dimension_numbers = #tpu.dot_dimension_numbers<[1], [0], [0], [1], [0, 0, 1, 1], [], []>} : vector<8x128xf32>, vector<128x64xf32>, vector<8x64xf32> -> vector<8x64xf32>
    %c0_46 = arith.constant 0 : index
    %c0_47 = arith.constant 0 : index
    %58 = vector.load %arg9[%c0_46, %c0_47] : memref<1x64xf32, #tpu.memory_space<vmem>>, vector<1x64xf32>
    %59 = vector.broadcast %58 : vector<1x64xf32> to vector<8x64xf32>
    %60 = arith.addf %57, %59 : vector<8x64xf32>
    %cst_48 = arith.constant 0.000000e+00 : f32
    %61 = vector.broadcast %cst_48 : f32 to vector<8x64xf32>
    %62 = arith.cmpf ogt, %60, %61 : vector<8x64xf32>
    %cst_49 = arith.constant 0.00999999977 : f32
    %63 = vector.broadcast %cst_49 : f32 to vector<8x64xf32>
    %64 = arith.mulf %63, %60 : vector<8x64xf32>
    %65 = arith.select %62, %60, %64 : vector<8x64xi1>, vector<8x64xf32>
    %66 = vector.extract_strided_slice %65 {offsets = [0, 0], sizes = [2, 64], strides = [1, 1]} : vector<8x64xf32> to vector<2x64xf32>
    %67 = vector.extract_strided_slice %65 {offsets = [2, 0], sizes = [2, 64], strides = [1, 1]} : vector<8x64xf32> to vector<2x64xf32>
    %68 = arith.maximumf %66, %67 : vector<2x64xf32>
    %69 = vector.extract_strided_slice %65 {offsets = [4, 0], sizes = [2, 64], strides = [1, 1]} : vector<8x64xf32> to vector<2x64xf32>
    %70 = arith.maximumf %68, %69 : vector<2x64xf32>
    %71 = vector.extract_strided_slice %65 {offsets = [6, 0], sizes = [2, 64], strides = [1, 1]} : vector<8x64xf32> to vector<2x64xf32>
    %72 = arith.maximumf %70, %71 : vector<2x64xf32>
    %73 = arith.truncf %72 : vector<2x64xf32> to vector<2x64xbf16>
    %c0_50 = arith.constant 0 : index
    %c0_51 = arith.constant 0 : index
    %74 = vector.load %arg10[%c0_50, %c0_51] : memref<64x1024xbf16, #tpu.memory_space<vmem>>, vector<64x1024xbf16>
    %cst_52 = arith.constant dense<0.000000e+00> : vector<2x1024xf32>
    %75 = tpu.matmul %73, %74, %cst_52 {dimension_numbers = #tpu.dot_dimension_numbers<[1], [0], [0], [1], [0, 0, 1, 1], [], []>} : vector<2x64xbf16>, vector<64x1024xbf16>, vector<2x1024xf32> -> vector<2x1024xf32>
    %c0_53 = arith.constant 0 : index
    %c0_54 = arith.constant 0 : index
    %76 = vector.load %arg11[%c0_53, %c0_54] : memref<1x1024xf32, #tpu.memory_space<vmem>>, vector<1x1024xf32>
    %77 = vector.broadcast %76 : vector<1x1024xf32> to vector<2x1024xf32>
    %78 = arith.addf %75, %77 : vector<2x1024xf32>
    %cst_55 = arith.constant 0.000000e+00 : f32
    %79 = vector.broadcast %cst_55 : f32 to vector<2x1024xf32>
    %80 = arith.cmpf ogt, %78, %79 : vector<2x1024xf32>
    %cst_56 = arith.constant 0.00999999977 : f32
    %81 = vector.broadcast %cst_56 : f32 to vector<2x1024xf32>
    %82 = arith.mulf %81, %78 : vector<2x1024xf32>
    %83 = arith.select %80, %78, %82 : vector<2x1024xi1>, vector<2x1024xf32>
    %84 = arith.truncf %83 : vector<2x1024xf32> to vector<2x1024xbf16>
    %c0_57 = arith.constant 0 : index
    %c0_58 = arith.constant 0 : index
    %85 = vector.load %arg12[%c0_57, %c0_58] : memref<1024x256xbf16, #tpu.memory_space<vmem>>, vector<1024x256xbf16>
    %cst_59 = arith.constant dense<0.000000e+00> : vector<2x256xf32>
    %86 = tpu.matmul %84, %85, %cst_59 {dimension_numbers = #tpu.dot_dimension_numbers<[1], [0], [0], [1], [0, 0, 1, 1], [], []>} : vector<2x1024xbf16>, vector<1024x256xbf16>, vector<2x256xf32> -> vector<2x256xf32>
    %c0_60 = arith.constant 0 : index
    %c0_61 = arith.constant 0 : index
    %87 = vector.load %arg13[%c0_60, %c0_61] : memref<1x256xf32, #tpu.memory_space<vmem>>, vector<1x256xf32>
    %88 = vector.broadcast %87 : vector<1x256xf32> to vector<2x256xf32>
    %89 = arith.addf %86, %88 : vector<2x256xf32>
    %cst_62 = arith.constant 0.000000e+00 : f32
    %90 = vector.broadcast %cst_62 : f32 to vector<2x256xf32>
    %91 = arith.cmpf ogt, %89, %90 : vector<2x256xf32>
    %cst_63 = arith.constant 0.00999999977 : f32
    %92 = vector.broadcast %cst_63 : f32 to vector<2x256xf32>
    %93 = arith.mulf %92, %89 : vector<2x256xf32>
    %94 = arith.select %91, %89, %93 : vector<2x256xi1>, vector<2x256xf32>
    %95 = arith.truncf %94 : vector<2x256xf32> to vector<2x256xbf16>
    %c0_64 = arith.constant 0 : index
    %c0_65 = arith.constant 0 : index
    %96 = vector.load %arg14[%c0_64, %c0_65] : memref<256x128xbf16, #tpu.memory_space<vmem>>, vector<256x128xbf16>
    %cst_66 = arith.constant dense<0.000000e+00> : vector<2x128xf32>
    %97 = tpu.matmul %95, %96, %cst_66 {dimension_numbers = #tpu.dot_dimension_numbers<[1], [0], [0], [1], [0, 0, 1, 1], [], []>} : vector<2x256xbf16>, vector<256x128xbf16>, vector<2x128xf32> -> vector<2x128xf32>
    %c0_67 = arith.constant 0 : index
    %c0_68 = arith.constant 0 : index
    %98 = vector.load %arg15[%c0_67, %c0_68] : memref<1x128xf32, #tpu.memory_space<vmem>>, vector<1x128xf32>
    %99 = vector.broadcast %98 : vector<1x128xf32> to vector<2x128xf32>
    %100 = arith.addf %97, %99 : vector<2x128xf32>
    %cst_69 = arith.constant 0.000000e+00 : f32
    %101 = vector.broadcast %cst_69 : f32 to vector<2x128xf32>
    %102 = arith.cmpf ogt, %100, %101 : vector<2x128xf32>
    %cst_70 = arith.constant 0.00999999977 : f32
    %103 = vector.broadcast %cst_70 : f32 to vector<2x128xf32>
    %104 = arith.mulf %103, %100 : vector<2x128xf32>
    %105 = arith.select %102, %100, %104 : vector<2x128xi1>, vector<2x128xf32>
    %106 = arith.truncf %105 : vector<2x128xf32> to vector<2x128xbf16>
    %c0_71 = arith.constant 0 : index
    %c0_72 = arith.constant 0 : index
    %107 = vector.load %arg16[%c0_71, %c0_72] : memref<128x128xbf16, #tpu.memory_space<vmem>>, vector<128x128xbf16>
    %cst_73 = arith.constant dense<0.000000e+00> : vector<2x128xf32>
    %108 = tpu.matmul %106, %107, %cst_73 {dimension_numbers = #tpu.dot_dimension_numbers<[1], [0], [0], [1], [0, 0, 1, 1], [], []>} : vector<2x128xbf16>, vector<128x128xbf16>, vector<2x128xf32> -> vector<2x128xf32>
    %c0_74 = arith.constant 0 : index
    %c0_75 = arith.constant 0 : index
    %109 = vector.load %arg17[%c0_74, %c0_75] : memref<1x128xf32, #tpu.memory_space<vmem>>, vector<1x128xf32>
    %110 = vector.broadcast %109 : vector<1x128xf32> to vector<2x128xf32>
    %111 = arith.addf %108, %110 : vector<2x128xf32>
    %c0_76 = arith.constant 0 : index
    %c0_77 = arith.constant 0 : index
    %112 = vector.load %arg18[%c0_76, %c0_77] : memref<2x128xf32, #tpu.memory_space<vmem>>, vector<2x128xf32>
    tpu.vector_store %arg18[%c0_76, %c0_77], %111 {strides = array<i32>} : memref<2x128xf32, #tpu.memory_space<vmem>>, vector<2x128xf32>,
    return
  }
  func.func @transform_0(%arg0: i32) -> (i32, i32) {
    %c0_i32 = arith.constant 0 : i32
    %c0_i32_0 = arith.constant 0 : i32
    %c0_i32_1 = arith.constant 0 : i32
    return %c0_i32, %c0_i32_0 : i32, i32
  }
  func.func @transform_1(%arg0: i32) -> (i32, i32) {
    %c0_i32 = arith.constant 0 : i32
    %c0_i32_0 = arith.constant 0 : i32
    %c0_i32_1 = arith.constant 0 : i32
    return %c0_i32, %c0_i32_0 : i32, i32
  }
  func.func @transform_2(%arg0: i32) -> (i32, i32) {
    %c0_i32 = arith.constant 0 : i32
    %c0_i32_0 = arith.constant 0 : i32
    %c0_i32_1 = arith.constant 0 : i32
    return %c0_i32, %c0_i32_0 : i32, i32
  }
  func.func @transform_3(%arg0: i32) -> (i32, i32, i32) {
    %c0_i32 = arith.constant 0 : i32
    %c0_i32_0 = arith.constant 0 : i32
    %c0_i32_1 = arith.constant 0 : i32
    %c0_i32_2 = arith.constant 0 : i32
    return %c0_i32, %c0_i32_0, %c0_i32_1 : i32, i32, i32
  }
  func.func @transform_4(%arg0: i32) -> (i32, i32) {
    %c0_i32 = arith.constant 0 : i32
    %c0_i32_0 = arith.constant 0 : i32
    %c0_i32_1 = arith.constant 0 : i32
    return %c0_i32, %c0_i32_0 : i32, i32
  }
  func.func @transform_5(%arg0: i32) -> (i32, i32) {
    %c0_i32 = arith.constant 0 : i32
    %c0_i32_0 = arith.constant 0 : i32
    %c0_i32_1 = arith.constant 0 : i32
    return %c0_i32, %c0_i32_0 : i32, i32
  }
  func.func @transform_6(%arg0: i32) -> (i32, i32, i32) {
    %c0_i32 = arith.constant 0 : i32
    %c0_i32_0 = arith.constant 0 : i32
    %c0_i32_1 = arith.constant 0 : i32
    %c0_i32_2 = arith.constant 0 : i32
    return %c0_i32, %c0_i32_0, %c0_i32_1 : i32, i32, i32
  }
  func.func @transform_7(%arg0: i32) -> (i32, i32) {
    %c0_i32 = arith.constant 0 : i32
    %c0_i32_0 = arith.constant 0 : i32
    %c0_i32_1 = arith.constant 0 : i32
    return %c0_i32, %c0_i32_0 : i32, i32
  }
  func.func @transform_8(%arg0: i32) -> (i32, i32) {
    %c0_i32 = arith.constant 0 : i32
    %c0_i32_0 = arith.constant 0 : i32
    %c0_i32_1 = arith.constant 0 : i32
    return %c0_i32, %c0_i32_0 : i32, i32
  }
  func.func @transform_9(%arg0: i32) -> (i32, i32) {
    %c0_i32 = arith.constant 0 : i32
    %c0_i32_0 = arith.constant 0 : i32
    %c0_i32_1 = arith.constant 0 : i32
    return %c0_i32, %c0_i32_0 : i32, i32
  }
  func.func @transform_10(%arg0: i32) -> (i32, i32) {
    %c0_i32 = arith.constant 0 : i32
    %c0_i32_0 = arith.constant 0 : i32
    %c0_i32_1 = arith.constant 0 : i32
    return %c0_i32, %c0_i32_0 : i32, i32
  }
  func.func @transform_11(%arg0: i32) -> (i32, i32) {
    %c0_i32 = arith.constant 0 : i32
    %c0_i32_0 = arith.constant 0 : i32
    %c0_i32_1 = arith.constant 0 : i32
    return %c0_i32, %c0_i32_0 : i32, i32
  }
  func.func @transform_12(%arg0: i32) -> (i32, i32) {
    %c0_i32 = arith.constant 0 : i32
    %c0_i32_0 = arith.constant 0 : i32
    %c0_i32_1 = arith.constant 0 : i32
    return %c0_i32, %c0_i32_0 : i32, i32
  }
  func.func @transform_13(%arg0: i32) -> (i32, i32) {
    %c0_i32 = arith.constant 0 : i32
    %c0_i32_0 = arith.constant 0 : i32
    %c0_i32_1 = arith.constant 0 : i32
    return %c0_i32, %c0_i32_0 : i32, i32
  }
  func.func @transform_14(%arg0: i32) -> (i32, i32) {
    %c0_i32 = arith.constant 0 : i32
    %c0_i32_0 = arith.constant 0 : i32
    %c0_i32_1 = arith.constant 0 : i32
    return %c0_i32, %c0_i32_0 : i32, i32
  }
  func.func @transform_15(%arg0: i32) -> (i32, i32) {
    %c0_i32 = arith.constant 0 : i32
    %c0_i32_0 = arith.constant 0 : i32
    %c0_i32_1 = arith.constant 0 : i32
    return %c0_i32, %c0_i32_0 : i32, i32
  }
  func.func @transform_16(%arg0: i32) -> (i32, i32) {
    %c0_i32 = arith.constant 0 : i32
    %c0_i32_0 = arith.constant 0 : i32
    %c0_i32_1 = arith.constant 0 : i32
    return %c0_i32, %c0_i32_0 : i32, i32
  }
  func.func @transform_17(%arg0: i32) -> (i32, i32) {
    %c0_i32 = arith.constant 0 : i32
    %c0_i32_0 = arith.constant 0 : i32
    %c0_i32_1 = arith.constant 0 : i32
    return %c0_i32, %c0_i32_0 : i32, i32
  }
}

</mosaic_0001>

<bundles_post_ra>
// kernel: squeeze.1
= control target key start
LH: loop header
LB: loop body
LE: loop exit
PB: predicated region body
PF: predicated region fallthrough
CT: control target
= control target key end

     0   :  { %s33_s12 = smov 3  ;;  %s527_s13 = smov 126   ;;  %vm394_vm0 = vcmask 1022976   ;;  %vm410_vm1 = vcmask 1039360   ;;  %vm16_vm2 = vcmask 39936   ;;  %vm398_vm3 = vcmask 23552   ;;  %s809_s0 = inlined_call_operand.vmem [shape: f32[2,260], index: 0, kind: input, shape index: {}]   ;;  %s810_s1 = inlined_call_operand.vmem [shape: f32[2,52,5], index: 1, kind: output, shape index: {}]  }
   0x1   :  { %v422_v0 = vld [vmem:[%s809_s0 + $0x2] sm:$0x3]  ;;  %v13_v1 = vld [vmem:[%s809_s0] sm:$0x3]  ;;  %v421_v2 = vld [vmem:[%s809_s0 + $0x4] sm:$0x3] }
   0x2   :  { %12 = vst [vmem:[#allocation0 + $0x8] sm:$0x3] %v422_v0  ;;  %14 = vst [vmem:[#allocation0] sm:$0x3] %v13_v1  ;;  %s19_s0 = smov 3  ;;  %s528_s14 = smov 121  }
   0x3   :  { %8 = vst [vmem:[#allocation0 + $0x10] sm:$0x3] %v421_v2  ;;  %s47_s15 = smov 3  ;;  %s529_s16 = smov 123   ;;  %vm414_vm4 = vcmask 7168   ;;  %vm401_vm5 = vcmask 39960  }
   0x4   :  { %s530_s17 = smov 118   ;;  %s61_s18 = smov 3  ;;  %vm417_vm6 = vcmask 39944  }
   0x5   :  { %s531_s19 = smov 116   ;;  %s532_s20 = smov 113  }
   0x6   :  { %s75_s21 = smov 3  ;;  %s533_s22 = smov 111  }
   0x7   :  { %s534_s23 = smov 108   ;;  %s89_s24 = smov 3 }
   0x8   :  { %s535_s25 = smov 106   ;;  %s536_s26 = smov 103  }
   0x9   :  { %v20_v3 = vld [vmem:[#allocation0 + $0x9] ss:$-1 sm:%s19_s0]   ;;  %v26_v5 = vld [vmem:[#allocation0] sm:$0x3]   ;;  %s537_s27 = smov 101   ;;  %s538_s28 = smov 98  }
   0xa   :  { %v34_v4 = vld [vmem:[#allocation0 + $0x9] ss:$-1 sm:%s33_s12]   ;;  %21 = vrot.lane.b32.xlu0 %v20_v3, %s527_s13  ;;  %v40_v6 = vld [vmem:[#allocation0] sm:$0x3]   ;;  %s123_s29 = smov 3  ;;  %s539_s30 = smov 96  }
   0xb   :  { %35 = vrot.lane.b32.xlu1 %v34_v4, %s528_s14  ;;  %v48_v7 = vld [vmem:[#allocation0 + $0x9] ss:$-1 sm:%s47_s15]   ;;  %v54_v8 = vld [vmem:[#allocation0] sm:$0x3]   ;;  %s540_s2 = smov 93   ;;  %s138_s3 = smov 3 }
   0xc   :  { %v62_v9 = vld [vmem:[#allocation0 + $0x9] ss:$-1 sm:%s61_s18]   ;;  %v68_v10 = vld [vmem:[#allocation0] sm:$0x3]   ;;  %s541_s4 = smov 91   ;;  %s542_s5 = smov 88  }
   0xd   :  { %v76_v11 = vld [vmem:[#allocation0 + $0x9] ss:$-1 sm:%s75_s21]   ;;  %v82_v12 = vld [vmem:[#allocation0] sm:$0x3]   ;;  %s153_s6 = smov 3  ;;  %s543_s7 = smov 86  }
   0xe   :  { %27 = vrot.lane.b32.xlu0 %v26_v5, %s529_s16  ;;  %v90_v13 = vld [vmem:[#allocation0 + $0x9] ss:$-1 sm:%s89_s24]   ;;  %v96_v14 = vld [vmem:[#allocation0] sm:$0x3]   ;;  %s544_s8 = smov 83   ;;  %s168_s9 = smov 3 }
   0xf   :  { %41 = vrot.lane.b32.xlu1 %v40_v6, %s530_s17  ;;  %v103_v15 = vld [vmem:[#allocation0 + $0x8] sm:$0x3]   ;;  %v109_v16 = vld [vmem:[#allocation0] sm:$0x3]   ;;  %s389_s10 = smov 3  ;;  %s392_s11 = smov 3 }
  0x10   :  { %v116_v17 = vld [vmem:[#allocation0 + $0x8] sm:$0x3]   ;;  %v124_v18 = vld [vmem:[#allocation0 + $0x1] ss:$-1 sm:%s123_s29]   ;;  %s405_s0 = smov 3  ;;  %s408_s12 = smov 3 }
  0x11   :  { %v131_v19 = vld [vmem:[#allocation0 + $0x8] sm:$0x3]   ;;  %v139_v20 = vld [vmem:[#allocation0 + $0x1] ss:$-1 sm:%s138_s3]   ;;  %s545_s13 = smov 81   ;;  %s546_s14 = smov 78  }
  0x12   :  { %49 = vrot.lane.b32.xlu0 %v48_v7, %s531_s19  ;;  %v146_v21 = vld [vmem:[#allocation0 + $0x8] sm:$0x3]   ;;  %v154_v22 = vld [vmem:[#allocation0 + $0x1] ss:$-1 sm:%s153_s6]   ;;  %v409_v28 = vld [vmem:[#allocation0 + $0x11] ss:$-1 sm:%s408_s12]  }
  0x13   :  { %55 = vrot.lane.b32.xlu1 %v54_v8, %s532_s20  ;;  %v161_v23 = vld [vmem:[#allocation0 + $0x8] sm:$0x3]   ;;  %v169_v24 = vld [vmem:[#allocation0 + $0x1] ss:$-1 sm:%s168_s9]   ;;  %s547_s15 = smov 76   ;;  %s548_s16 = smov 73  }
  0x14   :  { %v390_v25 = vld [vmem:[#allocation0 + $0x1] ss:$-1 sm:%s389_s10]   ;;  %v393_v26 = vld [vmem:[#allocation0 + $0x9] ss:$-1 sm:%s392_s11]   ;;  %s183_s17 = smov 3  ;;  %s549_s18 = smov 3  }
  0x15   :  { %v406_v27 = vld [vmem:[#allocation0 + $0x9] ss:$-1 sm:%s405_s0]   ;;  %v395_v29 = vsel %vm394_vm0, %v393_v26, %v390_v25  ;;  %s550_s19 = smov 1   ;;  %v184_v32 = vld [vmem:[#allocation0 + $0x1] ss:$-1 sm:%s183_s17]   ;;  %s198_s20 = smov 3 }
  0x16   :  { %63 = vrot.lane.b32.xlu0 %v62_v9, %s533_s22  ;;  %v411_v30 = vsel %vm410_vm1, %v409_v28, %v406_v27  ;;  %v176_v31 = vld [vmem:[#allocation0 + $0x8] sm:$0x3]   ;;  %s551_s21 = smov 71   ;;  %s552_s22 = smov 68   ;;  %v199_v34 = vld [vmem:[#allocation0 + $0x1] ss:$-1 sm:%s198_s20]  }
  0x17   :  { %69 = vrot.lane.b32.xlu1 %v68_v10, %s534_s23  ;;  %v191_v33 = vld [vmem:[#allocation0 + $0x8] sm:$0x3]   ;;  %s213_s23 = smov 3  ;;  %s553_s24 = smov 66   ;;  %v15_v53 = vld [vmem:[#allocation0] sm:$0x3]  }
  0x18   :  { %v206_v35 = vld [vmem:[#allocation0 + $0x8] sm:$0x3]   ;;  %v214_v36 = vld [vmem:[#allocation0 + $0x1] ss:$-1 sm:%s213_s23]   ;;  %s556_s29 = smov 58   ;;  %s557_s3 = smov 56  }
  0x19   :  { %s261_s6 = smov 3  ;;  %s269_s9 = smov 3  ;;  %17 = vst.msk [vmem:[%s810_s1] ss:$56 sm:$0x3] %vm16_vm2, %v15_v53  }
  0x1a   :  { %77 = vrot.lane.b32.xlu0 %v76_v11, %s535_s25  ;;  %s554_s25 = smov 63   ;;  %v262_v42 = vld [vmem:[#allocation0 + $0x1] ss:$-1 sm:%s261_s6]   ;;  %s277_s10 = smov 3  ;;  %v270_v43 = vld [vmem:[#allocation0 + $0x9] ss:$-1 sm:%s269_s9]  }
  0x1b   :  { %83 = vrot.lane.b32.xlu1 %v82_v12, %s536_s26  ;;  %s221_s26 = smov 3  ;;  %s561_s11 = smov 46   ;;  %v278_v44 = vld [vmem:[#allocation0 + $0x1] ss:$-1 sm:%s277_s10]  }
  0x1c   :  { %v222_v37 = vld [vmem:[#allocation0 + $0x9] ss:$-1 sm:%s221_s26]   ;;  %s562_s0 = smov 43   ;;  %s285_s12 = smov 3 }
  0x1d   :  { %v286_v45 = vld [vmem:[#allocation0 + $0x9] ss:$-1 sm:%s285_s12]   ;;  %s309_s17 = smov 3  ;;  %s317_s20 = smov 3 }
  0x1e   :  { %91 = vrot.lane.b32.xlu0 %v90_v13, %s537_s27  ;;  %s229_s27 = smov 3  ;;  %v310_v48 = vld [vmem:[#allocation0 + $0x1] ss:$-1 sm:%s309_s17]   ;;  %s568_s23 = smov 28   ;;  %v318_v49 = vld [vmem:[#allocation0 + $0x9] ss:$-1 sm:%s317_s20]  }
  0x1f   :  { %97 = vrot.lane.b32.xlu1 %v96_v14, %s538_s28  ;;  %s555_s28 = smov 61   ;;  %v230_v38 = vld [vmem:[#allocation0 + $0x1] ss:$-1 sm:%s229_s27]   ;;  %s569_s26 = smov 26  }
  0x20   :  { %s570_s27 = smov 23   ;;  %s373_s6 = smov 3 }
  0x21   :  { %v374_v57 = vld [vmem:[#allocation0 + $0x1] ss:$-1 sm:%s373_s6]   ;;  %s381_s9 = smov 3  ;;  %s575_s10 = smov 11  }
  0x22   :  { %104 = vrot.lane.b32.xlu0 %v103_v15, %s539_s30  ;;  %s237_s30 = smov 3  ;;  %v382_v58 = vld [vmem:[#allocation0 + $0x9] ss:$-1 sm:%s381_s9]  }
  0x23   :  { %110 = vrot.lane.b32.xlu1 %v109_v16, %s540_s2  ;;  %s245_s2 = smov 3  ;;  %v238_v39 = vld [vmem:[#allocation0 + $0x9] ss:$-1 sm:%s237_s30]  }
  0x24   :  { %v246_v40 = vld [vmem:[#allocation0 + $0x1] ss:$-1 sm:%s245_s2]  }
  0x26   :  { %117 = vrot.lane.b32.xlu0 %v116_v17, %s541_s4  ;;  %s558_s4 = smov 53  }
  0x27   :  { %125 = vrot.lane.b32.xlu1 %v124_v18, %s542_s5  ;;  %s253_s5 = smov 3 }
  0x28   :  { %v254_v41 = vld [vmem:[#allocation0 + $0x9] ss:$-1 sm:%s253_s5]   ;;  %s365_s5 = smov 3 }
  0x29   :  { %v366_v56 = vld [vmem:[#allocation0 + $0x9] ss:$-1 sm:%s365_s5]  }
  0x2a   :  { %132 = vrot.lane.b32.xlu0 %v131_v19, %s543_s7  ;;  %s559_s7 = smov 51  }
  0x2b   :  { %140 = vrot.lane.b32.xlu1 %v139_v20, %s544_s8  ;;  %s560_s8 = smov 48  }
  0x2e   :  { %147 = vrot.lane.b32.xlu0 %v146_v21, %s545_s13  ;;  %s293_s13 = smov 3 }
  0x2f   :  { %155 = vrot.lane.b32.xlu1 %v154_v22, %s546_s14  ;;  %s563_s14 = smov 41   ;;  %v294_v46 = vld [vmem:[#allocation0 + $0x1] ss:$-1 sm:%s293_s13]  }
  0x32   :  { %162 = vrot.lane.b32.xlu0 %v161_v23, %s547_s15  ;;  %s564_s15 = smov 38  }
  0x33   :  { %170 = vrot.lane.b32.xlu1 %v169_v24, %s548_s16  ;;  %s301_s16 = smov 3 }
  0x34   :  { %v302_v47 = vld [vmem:[#allocation0 + $0x9] ss:$-1 sm:%s301_s16]  }
  0x36   :  { %396 = vrot.lane.b32.xlu0 %v395_v29, %s549_s18  ;;  %s565_s18 = smov 36  }
  0x37   :  { %412 = vrot.lane.b32.xlu1 %v411_v30, %s550_s19  ;;  %s566_s19 = smov 33  }
  0x3a   :  { %177 = vrot.lane.b32.xlu0 %v176_v31, %s551_s21  ;;  %s325_s21 = smov 3 }
  0x3b   :  { %185 = vrot.lane.b32.xlu1 %v184_v32, %s552_s22  ;;  %s567_s22 = smov 31   ;;  %v326_v50 = vld [vmem:[#allocation0 + $0x1] ss:$-1 sm:%s325_s21]  }
  0x3e   :  { %192 = vrot.lane.b32.xlu0 %v191_v33, %s553_s24  ;;  %s333_s24 = smov 3 }
  0x3f   :  { %200 = vrot.lane.b32.xlu1 %v199_v34, %s554_s25  ;;  %s341_s25 = smov 3  ;;  %v334_v51 = vld [vmem:[#allocation0 + $0x9] ss:$-1 sm:%s333_s24]  }
  0x40   :  { %v342_v52 = vld [vmem:[#allocation0 + $0x1] ss:$-1 sm:%s341_s25]  }
  0x42   :  { %207 = vrot.lane.b32.xlu0 %v206_v35, %s555_s28  ;;  %s349_s28 = smov 3 }
  0x43   :  { %215 = vrot.lane.b32.xlu1 %v214_v36, %s556_s29  ;;  %s357_s29 = smov 3  ;;  %v350_v54 = vld [vmem:[#allocation0 + $0x9] ss:$-1 sm:%s349_s28]  }
  0x44   :  { %v358_v55 = vld [vmem:[#allocation0 + $0x1] ss:$-1 sm:%s357_s29]  }
  0x46   :  { %223 = vrot.lane.b32.xlu0 %v222_v37, %s557_s3  ;;  %s571_s3 = smov 21  }
  0x47   :  { %231 = vrot.lane.b32.xlu1 %v230_v38, %s558_s4  ;;  %s572_s4 = smov 18  }
  0x4a   :  { %239 = vrot.lane.b32.xlu0 %v238_v39, %s559_s7  ;;  %s573_s7 = smov 16  }
  0x4b   :  { %247 = vrot.lane.b32.xlu1 %v246_v40, %s560_s8  ;;  %s574_s8 = smov 13  }
  0x4e   :  { %255 = vrot.lane.b32.xlu0 %v254_v41, %s561_s11  ;;  %s576_s11 = smov 8  }
  0x4f   :  { %263 = vrot.lane.b32.xlu1 %v262_v42, %s562_s0  ;;  %s577_s0 = smov 6  }
  0x52   :  { %271 = vrot.lane.b32.xlu0 %v270_v43, %s563_s14 }
  0x53   :  { %279 = vrot.lane.b32.xlu1 %v278_v44, %s564_s15 }
  0x56   :  { %287 = vrot.lane.b32.xlu0 %v286_v45, %s565_s18 }
  0x57   :  { %295 = vrot.lane.b32.xlu1 %v294_v46, %s566_s19 }
  0x5a   :  { %303 = vrot.lane.b32.xlu0 %v302_v47, %s567_s22 }
  0x5b   :  { %311 = vrot.lane.b32.xlu1 %v310_v48, %s568_s23 }
  0x5e   :  { %319 = vrot.lane.b32.xlu0 %v318_v49, %s569_s26 }
  0x5f   :  { %327 = vrot.lane.b32.xlu1 %v326_v50, %s570_s27 }
  0x62   :  { %335 = vrot.lane.b32.xlu0 %v334_v51, %s571_s3 }
  0x63   :  { %343 = vrot.lane.b32.xlu1 %v342_v52, %s572_s4 }
  0x66   :  { %351 = vrot.lane.b32.xlu0 %v350_v54, %s573_s7 }
  0x67   :  { %359 = vrot.lane.b32.xlu1 %v358_v55, %s574_s8 }
  0x6a   :  { %367 = vrot.lane.b32.xlu0 %v366_v56, %s575_s10 }
  0x6b   :  { %375 = vrot.lane.b32.xlu1 %v374_v57, %s576_s11 }
  0x6e   :  { %383 = vrot.lane.b32.xlu0 %v382_v58, %s577_s0 }
  0x7c   :  { %v22_v59 = vpop.permute.xlu0 %21  }
  0x7d   :  { %v36_v60 = vpop.permute.xlu1 %35   ;;  %423 = vst.msk [vmem:[%s810_s1 + $0x52] ss:$-56 sm:$0x3] %vm16_vm2, %v22_v59  }
  0x7e   :  { %425 = vst.msk [vmem:[%s810_s1 + $0x53] ss:$-56 sm:$0x3] %vm16_vm2, %v36_v60  }
  0x80   :  { %v28_v61 = vpop.permute.xlu0 %27  }
  0x81   :  { %v42_v62 = vpop.permute.xlu1 %41   ;;  %424 = vst.msk [vmem:[%s810_s1 + $0x1] ss:$56 sm:$0x3] %vm16_vm2, %v28_v61  }
  0x82   :  { %426 = vst.msk [vmem:[%s810_s1 + $0x2] ss:$56 sm:$0x3] %vm16_vm2, %v42_v62  }
  0x84   :  { %v50_v63 = vpop.permute.xlu0 %49  }
  0x85   :  { %v56_v0 = vpop.permute.xlu1 %55   ;;  %427 = vst.msk [vmem:[%s810_s1 + $0x54] ss:$-56 sm:$0x3] %vm16_vm2, %v50_v63  }
  0x86   :  { %428 = vst.msk [vmem:[%s810_s1 + $0x3] ss:$56 sm:$0x3] %vm16_vm2, %v56_v0  }
  0x88   :  { %v64_v1 = vpop.permute.xlu0 %63  }
  0x89   :  { %v70_v2 = vpop.permute.xlu1 %69   ;;  %429 = vst.msk [vmem:[%s810_s1 + $0x55] ss:$-56 sm:$0x3] %vm16_vm2, %v64_v1  }
  0x8a   :  { %430 = vst.msk [vmem:[%s810_s1 + $0x4] ss:$56 sm:$0x3] %vm16_vm2, %v70_v2  }
  0x8c   :  { %v78_v3 = vpop.permute.xlu0 %77  }
  0x8d   :  { %v84_v4 = vpop.permute.xlu1 %83   ;;  %431 = vst.msk [vmem:[%s810_s1 + $0x56] ss:$-56 sm:$0x3] %vm16_vm2, %v78_v3  }
  0x8e   :  { %432 = vst.msk [vmem:[%s810_s1 + $0x5] ss:$56 sm:$0x3] %vm16_vm2, %v84_v4  }
  0x90   :  { %v92_v5 = vpop.permute.xlu0 %91  }
  0x91   :  { %v98_v6 = vpop.permute.xlu1 %97   ;;  %433 = vst.msk [vmem:[%s810_s1 + $0x57] ss:$-56 sm:$0x3] %vm16_vm2, %v92_v5  }
  0x92   :  { %434 = vst.msk [vmem:[%s810_s1 + $0x6] ss:$56 sm:$0x3] %vm16_vm2, %v98_v6  }
  0x94   :  { %v105_v7 = vpop.permute.xlu0 %104  }
  0x95   :  { %v111_v8 = vpop.permute.xlu1 %110   ;;  %435 = vst.msk [vmem:[%s810_s1 + $0x20] ss:$56 sm:$0x3] %vm16_vm2, %v105_v7  }
  0x96   :  { %436 = vst.msk [vmem:[%s810_s1 + $0x7] ss:$56 sm:$0x3] %vm16_vm2, %v111_v8  }
  0x98   :  { %v118_v9 = vpop.permute.xlu0 %117  }
  0x99   :  { %v126_v10 = vpop.permute.xlu1 %125   ;;  %437 = vst.msk [vmem:[%s810_s1 + $0x21] ss:$56 sm:$0x3] %vm16_vm2, %v118_v9  }
  0x9a   :  { %438 = vst.msk [vmem:[%s810_s1 + $0x40] ss:$-56 sm:$0x3] %vm16_vm2, %v126_v10  }
  0x9c   :  { %v133_v11 = vpop.permute.xlu0 %132  }
  0x9d   :  { %v141_v12 = vpop.permute.xlu1 %140   ;;  %439 = vst.msk [vmem:[%s810_s1 + $0x22] ss:$56 sm:$0x3] %vm16_vm2, %v133_v11  }
  0x9e   :  { %440 = vst.msk [vmem:[%s810_s1 + $0x41] ss:$-56 sm:$0x3] %vm16_vm2, %v141_v12  }
  0xa0   :  { %v148_v13 = vpop.permute.xlu0 %147  }
  0xa1   :  { %v156_v14 = vpop.permute.xlu1 %155   ;;  %441 = vst.msk [vmem:[%s810_s1 + $0x23] ss:$56 sm:$0x3] %vm16_vm2, %v148_v13  }
  0xa2   :  { %442 = vst.msk [vmem:[%s810_s1 + $0x42] ss:$-56 sm:$0x3] %vm16_vm2, %v156_v14  }
  0xa4   :  { %v163_v15 = vpop.permute.xlu0 %162  }
  0xa5   :  { %v171_v16 = vpop.permute.xlu1 %170   ;;  %443 = vst.msk [vmem:[%s810_s1 + $0x24] ss:$56 sm:$0x3] %vm16_vm2, %v163_v15  }
  0xa6   :  { %444 = vst.msk [vmem:[%s810_s1 + $0x43] ss:$-56 sm:$0x3] %vm16_vm2, %v171_v16  }
  0xa8   :  { %v397_v17 = vpop.permute.xlu0 %396  }
  0xa9   :  { %v413_v18 = vpop.permute.xlu1 %412   ;;  %472 = vst.msk [vmem:[%s810_s1 + $0x51] ss:$-56 sm:$0x3] %vm398_vm3, %v397_v17  }
  0xaa   :  { %474 = vst.msk [vmem:[%s810_s1 + $0x6b] ss:$-56 sm:$0x3] %vm414_vm4, %v413_v18  }
  0xab   :  { %473 = vst.msk [vmem:[%s810_s1 + $0x51] ss:$-56 sm:$0x3] %vm401_vm5, %v397_v17  }
  0xac   :  { %475 = vst.msk [vmem:[%s810_s1 + $0x6b] ss:$-56 sm:$0x3] %vm417_vm6, %v413_v18   ;;  %v178_v19 = vpop.permute.xlu0 %177  }
  0xad   :  { %v186_v20 = vpop.permute.xlu1 %185   ;;  %445 = vst.msk [vmem:[%s810_s1 + $0x25] ss:$56 sm:$0x3] %vm16_vm2, %v178_v19  }
  0xae   :  { %446 = vst.msk [vmem:[%s810_s1 + $0x44] ss:$-56 sm:$0x3] %vm16_vm2, %v186_v20  }
  0xb0   :  { %v193_v21 = vpop.permute.xlu0 %192  }
  0xb1   :  { %v201_v22 = vpop.permute.xlu1 %200   ;;  %447 = vst.msk [vmem:[%s810_s1 + $0x26] ss:$56 sm:$0x3] %vm16_vm2, %v193_v21  }
  0xb2   :  { %448 = vst.msk [vmem:[%s810_s1 + $0x45] ss:$-56 sm:$0x3] %vm16_vm2, %v201_v22  }
  0xb4   :  { %v208_v23 = vpop.permute.xlu0 %207  }
  0xb5   :  { %v216_v24 = vpop.permute.xlu1 %215   ;;  %449 = vst.msk [vmem:[%s810_s1 + $0x27] ss:$56 sm:$0x3] %vm16_vm2, %v208_v23  }
  0xb6   :  { %450 = vst.msk [vmem:[%s810_s1 + $0x46] ss:$-56 sm:$0x3] %vm16_vm2, %v216_v24  }
  0xb8   :  { %v224_v25 = vpop.permute.xlu0 %223  }
  0xb9   :  { %v232_v26 = vpop.permute.xlu1 %231   ;;  %451 = vst.msk [vmem:[%s810_s1 + $0x60] ss:$-56 sm:$0x3] %vm16_vm2, %v224_v25  }
  0xba   :  { %452 = vst.msk [vmem:[%s810_s1 + $0x47] ss:$-56 sm:$0x3] %vm16_vm2, %v232_v26  }
  0xbc   :  { %v240_v27 = vpop.permute.xlu0 %239  }
  0xbd   :  { %v248_v28 = vpop.permute.xlu1 %247   ;;  %453 = vst.msk [vmem:[%s810_s1 + $0x61] ss:$-56 sm:$0x3] %vm16_vm2, %v240_v27  }
  0xbe   :  { %454 = vst.msk [vmem:[%s810_s1 + $0x48] ss:$-56 sm:$0x3] %vm16_vm2, %v248_v28  }
  0xc0   :  { %v256_v29 = vpop.permute.xlu0 %255  }
  0xc1   :  { %v264_v30 = vpop.permute.xlu1 %263   ;;  %455 = vst.msk [vmem:[%s810_s1 + $0x62] ss:$-56 sm:$0x3] %vm16_vm2, %v256_v29  }
  0xc2   :  { %456 = vst.msk [vmem:[%s810_s1 + $0x49] ss:$-56 sm:$0x3] %vm16_vm2, %v264_v30  }
  0xc4   :  { %v272_v31 = vpop.permute.xlu0 %271  }
  0xc5   :  { %v280_v32 = vpop.permute.xlu1 %279   ;;  %457 = vst.msk [vmem:[%s810_s1 + $0x63] ss:$-56 sm:$0x3] %vm16_vm2, %v272_v31  }
  0xc6   :  { %458 = vst.msk [vmem:[%s810_s1 + $0x4a] ss:$-56 sm:$0x3] %vm16_vm2, %v280_v32  }
  0xc8   :  { %v288_v33 = vpop.permute.xlu0 %287  }
  0xc9   :  { %v296_v34 = vpop.permute.xlu1 %295   ;;  %459 = vst.msk [vmem:[%s810_s1 + $0x64] ss:$-56 sm:$0x3] %vm16_vm2, %v288_v33  }
  0xca   :  { %460 = vst.msk [vmem:[%s810_s1 + $0x4b] ss:$-56 sm:$0x3] %vm16_vm2, %v296_v34  }
  0xcc   :  { %v304_v35 = vpop.permute.xlu0 %303  }
  0xcd   :  { %v312_v36 = vpop.permute.xlu1 %311   ;;  %461 = vst.msk [vmem:[%s810_s1 + $0x65] ss:$-56 sm:$0x3] %vm16_vm2, %v304_v35  }
  0xce   :  { %462 = vst.msk [vmem:[%s810_s1 + $0x4c] ss:$-56 sm:$0x3] %vm16_vm2, %v312_v36  }
  0xd0   :  { %v320_v37 = vpop.permute.xlu0 %319  }
  0xd1   :  { %v328_v38 = vpop.permute.xlu1 %327   ;;  %463 = vst.msk [vmem:[%s810_s1 + $0x66] ss:$-56 sm:$0x3] %vm16_vm2, %v320_v37  }
  0xd2   :  { %464 = vst.msk [vmem:[%s810_s1 + $0x4d] ss:$-56 sm:$0x3] %vm16_vm2, %v328_v38  }
  0xd4   :  { %v336_v39 = vpop.permute.xlu0 %335  }
  0xd5   :  { %v344_v40 = vpop.permute.xlu1 %343   ;;  %465 = vst.msk [vmem:[%s810_s1 + $0x67] ss:$-56 sm:$0x3] %vm16_vm2, %v336_v39  }
  0xd6   :  { %466 = vst.msk [vmem:[%s810_s1 + $0x4e] ss:$-56 sm:$0x3] %vm16_vm2, %v344_v40  }
  0xd8   :  { %v352_v41 = vpop.permute.xlu0 %351  }
  0xd9   :  { %v360_v42 = vpop.permute.xlu1 %359   ;;  %467 = vst.msk [vmem:[%s810_s1 + $0x68] ss:$-56 sm:$0x3] %vm16_vm2, %v352_v41  }
  0xda   :  { %468 = vst.msk [vmem:[%s810_s1 + $0x4f] ss:$-56 sm:$0x3] %vm16_vm2, %v360_v42  }
  0xdc   :  { %v368_v43 = vpop.permute.xlu0 %367  }
  0xdd   :  { %v376_v44 = vpop.permute.xlu1 %375   ;;  %469 = vst.msk [vmem:[%s810_s1 + $0x69] ss:$-56 sm:$0x3] %vm16_vm2, %v368_v43  }
  0xde   :  { %470 = vst.msk [vmem:[%s810_s1 + $0x50] ss:$-56 sm:$0x3] %vm16_vm2, %v376_v44  }
  0xe0   :  { %v384_v45 = vpop.permute.xlu0 %383  }
  0xe1   :  { %471 = vst.msk [vmem:[%s810_s1 + $0x6a] ss:$-56 sm:$0x3] %vm16_vm2, %v384_v45  }

// kernel: cnn2_forward.1
= control target key start
LH: loop header
LB: loop body
LE: loop exit
PB: predicated region body
PF: predicated region fallthrough
CT: control target
= control target key end

     0   :  { %s5313_s0 = inlined_call_operand.vmem [shape: f32[104,5], index: 0, kind: input, shape index: {}]   ;;  %s5314_s1 = inlined_call_operand.vmem [shape: f32[5,8], index: 1, kind: input, shape index: {}]   ;;  %s5315_s2 = inlined_call_operand.hbm [shape: f32[1,8], index: 2, kind: input, shape index: {}]   ;;  %s5316_s3 = inlined_call_operand.hbm [shape: f32[4,28,52], index: 3, kind: input, shape index: {}]   ;;  %s5317_s4 = inlined_call_operand.vmem [shape: f32[32,32], index: 4, kind: input, shape index: {}]   ;;  %s5318_s5 = inlined_call_operand.hbm [shape: f32[1,32], index: 5, kind: input, shape index: {}]   ;;  %s5319_s6 = inlined_call_operand.vmem [shape: f32[4,8,13], index: 6, kind: input, shape index: {}]   ;;  %s5320_s7 = inlined_call_operand.vmem [shape: f32[128,64], index: 7, kind: input, shape index: {}]   ;;  %s5321_s8 = inlined_call_operand.hbm [shape: f32[1,64], index: 8, kind: input, shape index: {}]   ;;  %s5322_s9 = inlined_call_operand.vmem [shape: bf16[64,1024], index: 9, kind: input, shape index: {}]   ;;  %s5323_s10 = inlined_call_operand.hbm [shape: f32[1,1024], index: 10, kind: input, shape index: {}]   ;;  %s5324_s11 = inlined_call_operand.vmem [shape: bf16[1024,256], index: 11, kind: input, shape index: {}]   ;;  %s5325_s12 = inlined_call_operand.vmem [shape: f32[1,256], index: 12, kind: input, shape index: {}]   ;;  %s5326_s13 = inlined_call_operand.hbm [shape: bf16[256,128], index: 13, kind: input, shape index: {}]   ;;  %s5327_s14 = inlined_call_operand.hbm [shape: f32[1,128], index: 14, kind: input, shape index: {}]   ;;  %s5328_s15 = inlined_call_operand.vmem [shape: bf16[128,128], index: 15, kind: input, shape index: {}]   ;;  %s5329_s16 = inlined_call_operand.vmem [shape: f32[1,128], index: 16, kind: input, shape index: {}]   ;;  %s5330_s17 = inlined_call_operand.hbm [shape: f32[2,128], index: 17, kind: output, shape index: {}]  }
   0x1   :  { %5333 = sst [smem:[#allocation20_spill]] %s5313_s0 }
   0x2   :  { %5334 = sst [smem:[#allocation21_spill]] %s5314_s1 }
   0x3   :  { %5335 = sst [smem:[#allocation22_spill]] %s5330_s17 }
   0x4   :  { %22 = vsyncpa [#allocation3], 0 }
   0x5   :  { %23 = vsyncpa [#allocation6], 0 }
   0x6   :  { %24 = vsyncpa [#allocation9], 0 }
   0x7   :  { %25 = vsyncpa [#allocation12], 0 }
   0x8   :  { %26 = vsyncpa [#allocation4], 0  ;;  %s4268_s24 = smov [#allocation5]   ;;  %s4082_s28 = scalar_lea.hbm %s5316_s3, 2048 }
   0x9   :  { %s46_s25 = sshll.u32 %s4268_s24, 4  ;;  %p4083_p0 = scmp.ne.s32.totalorder %s5316_s3, %s4082_s28  ;;  %s47_s25 = int_to_ptr.vmem [resolvable:$true] %s46_s25 }
   0xa   :  { %p4086_p1 = scmp.lt.u32.totalorder %s4082_s28, %s5316_s3 }
   0xc   :  { %p4088_p2 = pnand %p4086_p1, %p4083_p0 }
   0xe   :  { %4091 = shalt.err (!%p4088_p2)
}
   0xf   :  { %s4092_s19 = scalar_lea.vmem %s47_s25, 2048  ;;  %p4097_p4 = scmp.lt.s32.totalorder %s47_s25, %s47_s25 }
  0x10   :  { %p4093_p3 = scmp.ne.s32.totalorder %s47_s25, %s4092_s19  ;;  %p4098_p5 = scmp.lt.s32.totalorder %s4092_s19, %s4092_s19 }
  0x12   :  { %p4099_p6 = por %p4098_p5, %p4097_p4 }
  0x14   :  { %p4100_p7 = pnand %p4099_p6, %p4093_p3 }
  0x16   :  { %4103 = shalt.err (!%p4100_p7)
}
  0x17   :  { %s4269_s1 = smov 128   ;;  %s4270_s20 = smov 8  }
  0x18   :  { %52 = dma.hbm_to_vmem [thread:$0]  %s5316_s3, 2048, %s47_s25, [#allocation6], %s4269_s1, %s4269_s1, %s4270_s20  }
  0x19   :  { %s4271_s23 = smov [#allocation8]   ;;  %s4272_s26 = smov [#allocation11]  }
  0x1a   :  { %s75_s24 = sshll.u32 %s4271_s23, 4  ;;  %s100_s27 = sshll.u32 %s4272_s26, 4  ;;  %s76_s24 = int_to_ptr.vmem [resolvable:$true] %s75_s24  ;;  %s101_s27 = int_to_ptr.vmem [resolvable:$true] %s100_s27 }
  0x1b   :  { %s4104_s0 = scalar_lea.hbm %s5321_s8, 16 }
  0x1c   :  { %p4105_p8 = scmp.ne.s32.totalorder %s5321_s8, %s4104_s0  ;;  %p4108_p9 = scmp.lt.u32.totalorder %s4104_s0, %s5321_s8 }
  0x1e   :  { %p4110_p10 = pnand %p4108_p9, %p4105_p8 }
  0x20   :  { %4113 = shalt.err (!%p4110_p10)
}
  0x21   :  { %s4114_s3 = scalar_lea.vmem %s76_s24, 16  ;;  %s4118_s25 = scalar_lea.vmem %s76_s24, 32 }
  0x22   :  { %p4115_p11 = scmp.ne.s32.totalorder %s76_s24, %s4114_s3  ;;  %p4119_p12 = scmp.lt.s32.totalorder %s76_s24, %s76_s24 }
  0x23   :  { %p4120_p13 = scmp.lt.s32.totalorder %s4118_s25, %s4114_s3 }
  0x25   :  { %p4121_p0 = por %p4120_p13, %p4119_p12 }
  0x27   :  { %p4122_p1 = pnand %p4121_p0, %p4115_p11 }
  0x29   :  { %4125 = shalt.err (!%p4122_p1)
}
  0x2a   :  { %78 = dma.hbm_to_vmem [thread:$0]  %s5321_s8, 16, %s76_s24, [#allocation9]  }
  0x2b   :  { %s4126_s17 = scalar_lea.hbm %s5326_s13, 2048 }
  0x2c   :  { %p4127_p2 = scmp.ne.s32.totalorder %s5326_s13, %s4126_s17  ;;  %p4130_p3 = scmp.lt.u32.totalorder %s4126_s17, %s5326_s13 }
  0x2e   :  { %p4132_p4 = pnand %p4130_p3, %p4127_p2 }
  0x30   :  { %4135 = shalt.err (!%p4132_p4)
}
  0x31   :  { %s4136_s30 = scalar_lea.vmem %s101_s27, 2048  ;;  %p4141_p6 = scmp.lt.s32.totalorder %s101_s27, %s101_s27 }
  0x32   :  { %p4137_p5 = scmp.ne.s32.totalorder %s101_s27, %s4136_s30  ;;  %p4142_p7 = scmp.lt.s32.totalorder %s4136_s30, %s4136_s30 }
  0x34   :  { %p4143_p8 = por %p4142_p7, %p4141_p6 }
  0x36   :  { %p4144_p9 = pnand %p4143_p8, %p4137_p5 }
  0x38   :  { %4147 = shalt.err (!%p4144_p9)
}
  0x39   :  { %s4273_s8 = smov 64   ;;  %s4274_s24 = smov 4  }
  0x3a   :  { %106 = dma.hbm_to_vmem [thread:$0]  %s5326_s13, 2048, %s101_s27, [#allocation12], %s4273_s8, %s4273_s8, %s4274_s24  }
  0x3b   :  { %s4275_s3 = smov [#allocation2]   ;;  %s4276_s1 = smov [#allocation7]  }
  0x3c   :  { %s37_s25 = sshll.u32 %s4275_s3, 4  ;;  %s61_s21 = sshll.u32 %s4276_s1, 4  ;;  %s38_s25 = int_to_ptr.vmem [resolvable:$true] %s37_s25  ;;  %s62_s21 = int_to_ptr.vmem [resolvable:$true] %s61_s21 }
  0x3d   :  { %s4148_s17 = scalar_lea.hbm %s5315_s2, 16 }
  0x3e   :  { %p4149_p10 = scmp.ne.s32.totalorder %s5315_s2, %s4148_s17  ;;  %p4152_p11 = scmp.lt.u32.totalorder %s4148_s17, %s5315_s2 }
  0x40   :  { %p4154_p12 = pnand %p4152_p11, %p4149_p10 }
  0x42   :  { %4157 = shalt.err (!%p4154_p12)
}
  0x43   :  { %s4158_s13 = scalar_lea.vmem %s38_s25, 16  ;;  %s4162_s27 = scalar_lea.vmem %s38_s25, 32 }
  0x44   :  { %p4159_p13 = scmp.ne.s32.totalorder %s38_s25, %s4158_s13  ;;  %p4163_p0 = scmp.lt.s32.totalorder %s38_s25, %s38_s25 }
  0x45   :  { %p4164_p1 = scmp.lt.s32.totalorder %s4162_s27, %s4158_s13 }
  0x47   :  { %p4165_p2 = por %p4164_p1, %p4163_p0 }
  0x49   :  { %p4166_p3 = pnand %p4165_p2, %p4159_p13 }
  0x4b   :  { %4169 = shalt.err (!%p4166_p3)
}
  0x4c   :  { %40 = dma.hbm_to_vmem [thread:$0]  %s5315_s2, 16, %s38_s25, [#allocation3]  }
  0x4d   :  { %s4170_s3 = scalar_lea.hbm %s5318_s5, 16 }
  0x4e   :  { %p4171_p4 = scmp.ne.s32.totalorder %s5318_s5, %s4170_s3  ;;  %p4174_p5 = scmp.lt.u32.totalorder %s4170_s3, %s5318_s5 }
  0x50   :  { %p4176_p6 = pnand %p4174_p5, %p4171_p4 }
  0x52   :  { %4179 = shalt.err (!%p4176_p6)
}
  0x53   :  { %s4180_s26 = scalar_lea.vmem %s62_s21, 16  ;;  %s4184_s28 = scalar_lea.vmem %s62_s21, 32 }
  0x54   :  { %p4181_p7 = scmp.ne.s32.totalorder %s62_s21, %s4180_s26  ;;  %p4185_p8 = scmp.lt.s32.totalorder %s62_s21, %s62_s21 }
  0x55   :  { %p4186_p9 = scmp.lt.s32.totalorder %s4184_s28, %s4180_s26 }
  0x57   :  { %p4187_p10 = por %p4186_p9, %p4185_p8 }
  0x59   :  { %p4188_p11 = pnand %p4187_p10, %p4181_p7 }
  0x5b   :  { %4191 = shalt.err (!%p4188_p11)
}
  0x5c   :  { %64 = dma.hbm_to_vmem [thread:$0]  %s5318_s5, 16, %s62_s21, [#allocation6]  }
  0x5d   :  { %s4277_s29 = smov [#allocation10]   ;;  %s4278_s13 = smov [#allocation13]  }
  0x5e   :  { %s87_s0 = sshll.u32 %s4277_s29, 4  ;;  %s113_s27 = sshll.u32 %s4278_s13, 4  ;;  %s88_s0 = int_to_ptr.vmem [resolvable:$true] %s87_s0  ;;  %s114_s27 = int_to_ptr.vmem [resolvable:$true] %s113_s27 }
  0x5f   :  { %s4192_s18 = scalar_lea.hbm %s5323_s10, 128 }
  0x60   :  { %p4193_p12 = scmp.ne.s32.totalorder %s5323_s10, %s4192_s18  ;;  %p4196_p13 = scmp.lt.u32.totalorder %s4192_s18, %s5323_s10 }
  0x62   :  { %p4198_p0 = pnand %p4196_p13, %p4193_p12 }
  0x64   :  { %4201 = shalt.err (!%p4198_p0)
}
  0x65   :  { %s4202_s5 = scalar_lea.vmem %s88_s0, 128  ;;  %p4207_p2 = scmp.lt.s32.totalorder %s88_s0, %s88_s0 }
  0x66   :  { %p4203_p1 = scmp.ne.s32.totalorder %s88_s0, %s4202_s5  ;;  %p4208_p3 = scmp.lt.s32.totalorder %s4202_s5, %s4202_s5 }
  0x68   :  { %p4209_p4 = por %p4208_p3, %p4207_p2 }
  0x6a   :  { %p4210_p5 = pnand %p4209_p4, %p4203_p1 }
  0x6c   :  { %4213 = shalt.err (!%p4210_p5)
}
  0x6d   :  { %90 = dma.hbm_to_vmem [thread:$0]  %s5323_s10, 128, %s88_s0, [#allocation9]  }
  0x6e   :  { %s4214_s28 = scalar_lea.hbm %s5327_s14, 16 }
  0x6f   :  { %p4215_p6 = scmp.ne.s32.totalorder %s5327_s14, %s4214_s28  ;;  %p4218_p7 = scmp.lt.u32.totalorder %s4214_s28, %s5327_s14 }
  0x71   :  { %p4220_p8 = pnand %p4218_p7, %p4215_p6 }
  0x73   :  { %4223 = shalt.err (!%p4220_p8)
}
  0x74   :  { %s4224_s30 = scalar_lea.vmem %s114_s27, 16  ;;  %s4228_s24 = scalar_lea.vmem %s114_s27, 32 }
  0x75   :  { %p4225_p9 = scmp.ne.s32.totalorder %s114_s27, %s4224_s30  ;;  %p4229_p10 = scmp.lt.s32.totalorder %s114_s27, %s114_s27 }
  0x76   :  { %p4230_p11 = scmp.lt.s32.totalorder %s4228_s24, %s4224_s30 }
  0x78   :  { %p4231_p12 = por %p4230_p11, %p4229_p10 }
  0x7a   :  { %p4232_p13 = pnand %p4231_p12, %p4225_p9 }
  0x7c   :  { %4235 = shalt.err (!%p4232_p13)
}
  0x7d   :  { %116 = dma.hbm_to_vmem [thread:$0]  %s5327_s14, 16, %s114_s27, [#allocation12]  }
  0x7e   :  { %4258 = dma.done.wait [#allocation3], 16  }
  0x7f   :  { %4259 = vsyncadd [#allocation3], 4294967280 }
  0x80   :  { %4260 = dma.done.wait [#allocation6], 2064  }
  0x81   :  { %4261 = vsyncadd [#allocation6], 4294965232 }
  0x82   :  { %4262 = dma.done.wait [#allocation9], 144  }
  0x83   :  { %4263 = vsyncadd [#allocation9], 4294967152 }
  0x84   :  { %4264 = dma.done.wait [#allocation12], 2064  }
  0x85   :  { %4265 = vsyncadd [#allocation12], 4294965232  ;;  %v4279_v0 = vmov 0.0   ;;  %vm4280_vm0 = vmmov 0   ;;  %vm204_vm1 = vcmask 1044480   ;;  %vm164_vm2 = vcmask 39936  }
  0x86   :  { %3519 = vmatprep.subr.mxu0 %v4279_v0  ;;  %3521 = vmatprep.mubr.msk.f32.mxu0 %vm4280_vm0, %v4279_v0  ;;  %s5336_s14 = sld [smem:[#allocation21_spill]]  ;;  %s5337_s1 = sld [smem:[#allocation20_spill]]  ;;  %v412_v15 = vld [vmem:[#allocation5] sm:$0xff]  ;;  %vm416_vm3 = vcmask 424960   ;;  %v4553_v29 = vld [vmem:[#allocation2] ss:$0 sm:$0xff] }
  0x87   :  { %3574 = vmatprep.mubr.msk.f32.mxu1 %vm416_vm3, %v412_v15  ;;  %v722_v16 = vld [vmem:[#allocation5 + $0x60] sm:$0xff]  ;;  %vm384_vm7 = vcmask 1043456   ;;  %s4282_s24 = smov 16   ;;  %s4285_s29 = smov 32  }
  0x88   :  { %s4288_s3 = smov [#allocation14]  }
  0x89   :  { %s3139_s22 = sshll.u32 %s4288_s3, 4  ;;  %s3140_s22 = int_to_ptr.vmem [resolvable:$true] %s3139_s22 }
  0x8a   :  { %p4241_p1 = scmp.lt.s32.totalorder %s3140_s22, %s3140_s22 }
  0x8c   :  { %v156_v1 = vld [vmem:[%s5336_s14] sm:$0x1f]  ;;  %v144_v3 = vld [vmem:[%s5337_s1 + $0x8] sm:$0xff]  ;;  %v145_v4 = vld [vmem:[%s5337_s1 + $0x10] sm:$0xff] }
  0x8d   :  { %v143_v2 = vld [vmem:[%s5337_s1] sm:$0xff]  ;;  %3520 = vmatpush3.msk.msra.mxu0 %vm204_vm1, %v156_v1  ;;  %v146_v5 = vld [vmem:[%s5337_s1 + $0x18] sm:$0xff]  ;;  %v148_v7 = vld [vmem:[%s5337_s1 + $0x28] sm:$0xff] }
  0x8e   :  { %3522 = vmatmul.mubr.msk.f32.vlgmr.msra.gmra.mrb[0].mxu0 %vm164_vm2, %v143_v2  ;;  %v147_v6 = vld [vmem:[%s5337_s1 + $0x20] sm:$0xff]  ;;  %v149_v8 = vld [vmem:[%s5337_s1 + $0x30] sm:$0xff]  ;;  %v150_v9 = vld [vmem:[%s5337_s1 + $0x38] sm:$0xff] }
  0x8f   :  { %3524 = vmatprep.mubr.msk.f32.mxu0 %vm4280_vm0, %v4279_v0  ;;  %v151_v10 = vld [vmem:[%s5337_s1 + $0x40] sm:$0xff]  ;;  %v152_v11 = vld [vmem:[%s5337_s1 + $0x48] sm:$0xff]  ;;  %v153_v12 = vld [vmem:[%s5337_s1 + $0x50] sm:$0xff] }
  0x90   :  { %v154_v13 = vld [vmem:[%s5337_s1 + $0x58] sm:$0xff]  ;;  %v155_v14 = vld [vmem:[%s5337_s1 + $0x60] sm:$0xff]  ;;  %s4281_s1 = smov 24  }
  0x92   :  { %3525 = vmatmul.mubr.msk.f32.gmra.mrb[2].mxu0 %vm164_vm2, %v144_v3 }
  0x93   :  { %3527 = vmatprep.mubr.msk.f32.mxu0 %vm4280_vm0, %v4279_v0 }
  0x96   :  { %3528 = vmatmul.mubr.msk.f32.gmra.mrb[4].mxu0 %vm164_vm2, %v145_v4 }
  0x97   :  { %3530 = vmatprep.mubr.msk.f32.mxu0 %vm4280_vm0, %v4279_v0 }
  0x9a   :  { %3531 = vmatmul.mubr.msk.f32.gmra.mrb[6].mxu0 %vm164_vm2, %v146_v5 }
  0x9b   :  { %3533 = vmatprep.mubr.msk.f32.mxu0 %vm4280_vm0, %v4279_v0 }
  0x9e   :  { %3534 = vmatmul.mubr.msk.f32.gmra.mrb[8].mxu0 %vm164_vm2, %v147_v6 }
  0x9f   :  { %3536 = vmatprep.mubr.msk.f32.mxu0 %vm4280_vm0, %v4279_v0 }
  0xa2   :  { %3537 = vmatmul.mubr.msk.f32.gmra.mrb[10].mxu0 %vm164_vm2, %v148_v7 }
  0xa3   :  { %3539 = vmatprep.mubr.msk.f32.mxu0 %vm4280_vm0, %v4279_v0 }
  0xa6   :  { %3540 = vmatmul.mubr.msk.f32.gmra.mrb[12].mxu0 %vm164_vm2, %v149_v8 }
  0xa7   :  { %3542 = vmatprep.mubr.msk.f32.mxu0 %vm4280_vm0, %v4279_v0 }
  0xaa   :  { %3543 = vmatmul.mubr.msk.f32.gmra.mrb[14].mxu0 %vm164_vm2, %v150_v9 }
  0xab   :  { %3545 = vmatprep.mubr.msk.f32.mxu0 %vm4280_vm0, %v4279_v0 }
  0xae   :  { %3546 = vmatmul.mubr.msk.f32.gmra.mrb[16].mxu0 %vm164_vm2, %v151_v10 }
  0xaf   :  { %3548 = vmatprep.mubr.msk.f32.mxu0 %vm4280_vm0, %v4279_v0 }
  0xb2   :  { %3549 = vmatmul.mubr.msk.f32.gmra.mrb[18].mxu0 %vm164_vm2, %v152_v11 }
  0xb3   :  { %3551 = vmatprep.mubr.msk.f32.mxu0 %vm4280_vm0, %v4279_v0 }
  0xb6   :  { %3552 = vmatmul.mubr.msk.f32.gmra.mrb[20].mxu0 %vm164_vm2, %v153_v12 }
  0xb7   :  { %3554 = vmatprep.mubr.msk.f32.mxu0 %vm4280_vm0, %v4279_v0 }
  0xba   :  { %3555 = vmatmul.mubr.msk.f32.gmra.mrb[22].mxu0 %vm164_vm2, %v154_v13 }
  0xbb   :  { %3557 = vmatprep.mubr.msk.f32.mxu0 %vm4280_vm0, %v4279_v0 }
  0xbe   :  { %3558 = vmatmul.mubr.msk.f32.gmra.mrb[24].mxu0 %vm164_vm2, %v155_v14 }
  0xbf   :  { %3634 = vmatprep.mubr.msk.f32.mxu0 %vm416_vm3, %v722_v16 }
 0x161   :  { %v274_v17 = vpop.f32.mrb[0].mxu0 }
 0x162   :  { %v3523_v18 = vpop.f32.mrb[1].mxu0  ;;  %v275_v34 = vadd.f32 %v4553_v29, %v274_v17 }
 0x164   :  { %v351_v40 = vmul.f32 0.01, %v275_v34  ;;  %vm338_vm6 = vcmp.gt.f32.partialorder %v275_v34, 0.0 }
 0x165   :  { %v279_v19 = vpop.f32.mrb[2].mxu0 }
 0x166   :  { %v3526_v20 = vpop.f32.mrb[3].mxu0  ;;  %v280_v41 = vadd.f32 %v4553_v29, %v279_v19  ;;  %v364_v49 = vsel %vm338_vm6, %v275_v34, %v351_v40  ;;  %vm881_vm6 = vcmask 195584  }
 0x168   :  { %v352_v50 = vmul.f32 0.01, %v280_v41  ;;  %vm339_vm9 = vcmp.gt.f32.partialorder %v280_v41, 0.0 }
 0x169   :  { %v284_v21 = vpop.f32.mrb[4].mxu0 }
 0x16a   :  { %v3529_v22 = vpop.f32.mrb[5].mxu0  ;;  %v285_v51 = vadd.f32 %v4553_v29, %v284_v21  ;;  %v365_v60 = vsel %vm339_vm9, %v280_v41, %v352_v50  ;;  %v519_v50 = vld [vmem:[#allocation5 + $0x28] sm:$0xff] }
 0x16c   :  { %v353_v61 = vmul.f32 0.01, %v285_v51  ;;  %vm340_vm11 = vcmp.gt.f32.partialorder %v285_v51, 0.0 }
 0x16d   :  { %v289_v23 = vpop.f32.mrb[6].mxu0 }
 0x16e   :  { %v3532_v24 = vpop.f32.mrb[7].mxu0  ;;  %v290_v62 = vadd.f32 %v4553_v29, %v289_v23  ;;  %v366_v9 = vsel %vm340_vm11, %v285_v51, %v353_v61  ;;  %v520_v51 = vld [vmem:[#allocation5 + $0x30] sm:$0xff] }
 0x170   :  { %v354_v10 = vmul.f32 0.01, %v290_v62  ;;  %vm341_vm13 = vcmp.gt.f32.partialorder %v290_v62, 0.0 }
 0x171   :  { %v294_v25 = vpop.f32.mrb[8].mxu0 }
 0x172   :  { %v3535_v26 = vpop.f32.mrb[9].mxu0  ;;  %v295_v11 = vadd.f32 %v4553_v29, %v294_v25  ;;  %v367_v20 = vsel %vm341_vm13, %v290_v62, %v354_v10  ;;  %vm1022_vm13 = vcmask 1046528  }
 0x174   :  { %v355_v21 = vmul.f32 0.01, %v295_v11  ;;  %vm342_vm15 = vcmp.gt.f32.partialorder %v295_v11, 0.0 }
 0x175   :  { %v4551_v27 = vpop.f32.mrb[10].mxu0 }
 0x176   :  { %v3538_v28 = vpop.f32.mrb[11].mxu0  ;;  %v300_v22 = vadd.f32 %v4553_v29, %v4551_v27  ;;  %v368_v34 = vsel %vm342_vm15, %v295_v11, %v355_v21 }
 0x179   :  { %v304_v30 = vpop.f32.mrb[12].mxu0 }
 0x17a   :  { %v305_v31 = vadd.f32 %v4553_v29, %v304_v30  ;;  %v3541_v32 = vpop.f32.mrb[13].mxu0 }
 0x17c   :  { %v357_v33 = vmul.f32 0.01, %v305_v31  ;;  %vm344_vm4 = vcmp.gt.f32.partialorder %v305_v31, 0.0 }
 0x17d   :  { %v309_v35 = vpop.f32.mrb[14].mxu0 }
 0x17e   :  { %v310_v36 = vadd.f32 %v4553_v29, %v309_v35  ;;  %v3544_v37 = vpop.f32.mrb[15].mxu0  ;;  %v4558_v38 = vsel %vm344_vm4, %v305_v31, %v357_v33  ;;  %v356_v35 = vmul.f32 0.01, %v300_v22  ;;  %vm343_vm4 = vcmp.gt.f32.partialorder %v300_v22, 0.0 }
 0x17f   :  { %v385_v46 = vrot.slane %v4558_v38, 4 }
 0x180   :  { %vm345_vm5 = vcmp.gt.f32.partialorder %v310_v36, 0.0  ;;  %v358_v39 = vmul.f32 0.01, %v310_v36  ;;  %v369_v40 = vsel %vm343_vm4, %v300_v22, %v356_v35  ;;  %vm1348_vm4 = vcmask 785408  }
 0x181   :  { %v314_v42 = vpop.f32.mrb[16].mxu0 }
 0x182   :  { %v371_v43 = vsel %vm345_vm5, %v310_v36, %v358_v39  ;;  %v315_v44 = vadd.f32 %v4553_v29, %v314_v42  ;;  %v3547_v45 = vpop.f32.mrb[17].mxu0  ;;  %vm876_vm5 = vcmask 130048  }
 0x183   :  { %v386_v47 = vrot.slane %v371_v43, 4  ;;  %v414_v45 = vld [vmem:[#allocation5 + $0x10] sm:$0xff] }
 0x184   :  { %vm346_vm8 = vcmp.gt.f32.partialorder %v315_v44, 0.0  ;;  %v359_v48 = vmul.f32 0.01, %v315_v44 }
 0x185   :  { %v387_v52 = vsel %vm384_vm7, %v385_v46, %v386_v47  ;;  %v319_v53 = vpop.f32.mrb[18].mxu0  ;;  %v723_v46 = vld [vmem:[#allocation5 + $0x68] sm:$0xff] }
 0x186   :  { %v405_v54 = vmax.f32 %v364_v49, %v387_v52  ;;  %v372_v55 = vsel %vm346_vm8, %v315_v44, %v359_v48  ;;  %v320_v56 = vadd.f32 %v4553_v29, %v319_v53  ;;  %v3550_v57 = vpop.f32.mrb[19].mxu0  ;;  %v413_v44 = vld [vmem:[#allocation5 + $0x8] sm:$0xff]  ;;  %v518_v48 = vld [vmem:[#allocation5 + $0x20] sm:$0xff]  ;;  %v725_v49 = vld [vmem:[#allocation5 + $0x78] sm:$0xf] }
 0x187   :  { %v388_v58 = vrot.slane %v372_v55, 4  ;;  %v521_v52 = vld [vmem:[#allocation5 + $0x38] sm:$0xf]  ;;  %v620_v53 = vld [vmem:[#allocation5 + $0x40] sm:$0xff]  ;;  %v622_v55 = vld [vmem:[#allocation5 + $0x50] sm:$0xff] }
 0x188   :  { %vm347_vm10 = vcmp.gt.f32.partialorder %v320_v56, 0.0  ;;  %v360_v59 = vmul.f32 0.01, %v320_v56 }
 0x189   :  { %v389_v63 = vsel %vm384_vm7, %v386_v47, %v388_v58  ;;  %v324_v1 = vpop.f32.mrb[20].mxu0  ;;  %v415_v47 = vld [vmem:[#allocation5 + $0x18] sm:$0xf] }
 0x18a   :  { %v406_v2 = vmax.f32 %v365_v60, %v389_v63  ;;  %v373_v3 = vsel %vm347_vm10, %v320_v56, %v360_v59  ;;  %v325_v4 = vadd.f32 %v4553_v29, %v324_v1  ;;  %v3553_v5 = vpop.f32.mrb[21].mxu0  ;;  %v623_v56 = vld [vmem:[#allocation5 + $0x58] sm:$0xf] }
 0x18b   :  { %v390_v6 = vrot.slane %v373_v3, 4  ;;  %v887_v3 = vld [vmem:[%s5317_s4 + $0x8] sm:$0xff] }
 0x18c   :  { %v4569_v7 = vpack.c.bf16 %v406_v2, %v405_v54  ;;  %vm348_vm12 = vcmp.gt.f32.partialorder %v325_v4, 0.0  ;;  %v361_v8 = vmul.f32 0.01, %v325_v4  ;;  %v621_v54 = vld [vmem:[#allocation5 + $0x48] sm:$0xff]  ;;  %v886_v2 = vld [vmem:[%s5317_s4] sm:$0xff] }
 0x18d   :  { %v391_v12 = vsel %vm384_vm7, %v388_v58, %v390_v6  ;;  %v329_v13 = vpop.f32.mrb[22].mxu0 }
 0x18e   :  { %v407_v14 = vmax.f32 %v366_v9, %v391_v12  ;;  %v374_v15 = vsel %vm348_vm12, %v325_v4, %v361_v8  ;;  %v330_v16 = vadd.f32 %v4553_v29, %v329_v13  ;;  %3738 = vmatprep.subr.bf16.mxu1 %v4569_v7  ;;  %3774 = vmatprep.subr.bf16.mxu0 %v4569_v7  ;;  %v3556_v17 = vpop.f32.mrb[23].mxu0  ;;  %v889_v8 = vld [vmem:[%s5317_s4 + $0x18] sm:$0xff]  ;;  %vm1010_vm12 = vcmask 1041408  }
 0x18f   :  { %v392_v18 = vrot.slane %v374_v15, 4  ;;  %3740 = vmatpush3.bf16.msra.mxu1 %v4569_v7  ;;  %3776 = vmatpush3.bf16.msra.mxu0 %v4569_v7  ;;  %v3785_v4 = vpack.c.bf16 %v887_v3, %v886_v2 }
 0x190   :  { %vm349_vm14 = vcmp.gt.f32.partialorder %v330_v16, 0.0  ;;  %v362_v19 = vmul.f32 0.01, %v330_v16 }
 0x191   :  { %v393_v23 = vsel %vm384_vm7, %v390_v6, %v392_v18  ;;  %v334_v24 = vpop.f32.mrb[24].mxu0 }
 0x192   :  { %v408_v25 = vmax.f32 %v367_v20, %v393_v23  ;;  %v375_v26 = vsel %vm349_vm14, %v330_v16, %v362_v19  ;;  %v335_v28 = vadd.f32 %v4553_v29, %v334_v24  ;;  %v3559_v30 = vpop.f32.mrb[25].mxu0  ;;  %vm4284_vm14 = vmmov 1  }
 0x193   :  { %v394_v31 = vrot.slane %v375_v26, 4  ;;  %vm3795_vm15 = vmpackc.low %vm204_vm1, %vm4284_vm14  ;;  %vm1346_vm1 = vcmask 523264  }
 0x194   :  { %v3741_v32 = vpack.c.bf16 %v408_v25, %v407_v14  ;;  %vm350_vm2 = vcmp.gt.f32.partialorder %v335_v28, 0.0  ;;  %v363_v33 = vmul.f32 0.01, %v335_v28 }
 0x195   :  { %v395_v36 = vsel %vm384_vm7, %v392_v18, %v394_v31 }
 0x196   :  { %v409_v37 = vmax.f32 %v368_v34, %v395_v36  ;;  %v376_v27 = vsel %vm350_vm2, %v335_v28, %v363_v33  ;;  %3742 = vmatprep.subr.bf16.mxu1 %v3741_v32  ;;  %3778 = vmatprep.subr.bf16.mxu0 %v3741_v32  ;;  %vm1031_vm2 = vcmask 105472  }
 0x197   :  { %v396_v39 = vrot.slane %v376_v27, 4  ;;  %3744 = vmatpush3.bf16.msra.mxu1 %v3741_v32  ;;  %3780 = vmatpush3.bf16.msra.mxu0 %v3741_v32 }
 0x199   :  { %v397_v29 = vsel %vm384_vm7, %v394_v31, %v396_v39  ;;  %v411_v41 = vmax.f32 %v4558_v38, %v396_v39  ;;  %v724_v38 = vld [vmem:[#allocation5 + $0x70] sm:$0xff] }
 0x19a   :  { %v410_v42 = vmax.f32 %v369_v40, %v397_v29 }
 0x19c   :  { %v3745_v43 = vpack.c.bf16 %v410_v42, %v409_v37  ;;  %v3186_v42 = vld [vmem:[#allocation7] ss:$0 sm:$0xff] }
 0x19e   :  { %3746 = vmatprep.subr.bf16.mxu1 %v3745_v43  ;;  %3782 = vmatprep.subr.bf16.mxu0 %v3745_v43 }
 0x19f   :  { %3748 = vmatpush3.bf16.msra.mxu1 %v3745_v43  ;;  %3784 = vmatpush3.bf16.msra.mxu0 %v3745_v43 }
 0x1a0   :  { %3572 = vmatprep.subr.msk.mxu1 %vm384_vm7, %v411_v41  ;;  %3632 = vmatprep.subr.msk.mxu0 %vm384_vm7, %v411_v41 }
 0x1a3   :  { %3573 = vmatpush3.msk.msra.mxu1 %vm384_vm7, %v411_v41  ;;  %3633 = vmatpush3.msk.msra.mxu0 %vm384_vm7, %v411_v41 }
 0x1a4   :  { %3750 = vmatprep.subr.bf16.mxu1 %v4569_v7  ;;  %3575 = vmatmul.mubr.msk.f32.vlgmr.msra.gmra.mrb[0].mxu1 %vm416_vm3, %v413_v44 }
 0x1a5   :  { %3752 = vmatpush3.bf16.msra.mxu1 %v4569_v7  ;;  %3577 = vmatprep.mubr.msk.f32.mxu1 %vm416_vm3, %v414_v45 }
 0x1a6   :  { %3754 = vmatprep.subr.bf16.mxu1 %v3741_v32  ;;  %3635 = vmatmul.mubr.msk.f32.vlgmr.msra.gmra.mrb[26].mxu0 %vm416_vm3, %v723_v46 }
 0x1a7   :  { %3637 = vmatprep.mubr.msk.f32.mxu0 %vm416_vm3, %v724_v38 }
 0x1a8   :  { %3578 = vmatmul.mubr.msk.f32.gmra.mrb[2].mxu1 %vm416_vm3, %v415_v47 }
 0x1a9   :  { %3756 = vmatpush3.bf16.msra.mxu1 %v3741_v32  ;;  %3594 = vmatprep.mubr.msk.f32.mxu1 %vm416_vm3, %v518_v48 }
 0x1aa   :  { %3758 = vmatprep.subr.bf16.mxu1 %v3745_v43  ;;  %3638 = vmatmul.mubr.msk.f32.gmra.mrb[28].mxu0 %vm416_vm3, %v725_v49 }
 0x1ab   :  { %3665 = vmatprep.mubr.msk.f32.mxu0 %vm4280_vm0, %v4279_v0 }
 0x1ad   :  { %3760 = vmatpush3.bf16.msra.mxu1 %v3745_v43 }
 0x1ae   :  { %3592 = vmatprep.subr.msk.mxu1 %vm384_vm7, %v411_v41 }
 0x1b1   :  { %3593 = vmatpush3.msk.msra.mxu1 %vm384_vm7, %v411_v41 }
 0x1b2   :  { %3595 = vmatmul.mubr.msk.f32.vlgmr.msra.gmra.mrb[4].mxu1 %vm416_vm3, %v519_v50  ;;  %3762 = vmatprep.subr.bf16.mxu1 %v4569_v7 }
 0x1b3   :  { %3764 = vmatpush3.bf16.msra.mxu1 %v4569_v7  ;;  %3597 = vmatprep.mubr.msk.f32.mxu1 %vm416_vm3, %v520_v51  ;;  %v888_v7 = vld [vmem:[%s5317_s4 + $0x10] sm:$0xff] }
 0x1b4   :  { %3766 = vmatprep.subr.bf16.mxu1 %v3741_v32  ;;  %v3789_v9 = vpack.c.bf16 %v889_v8, %v888_v7  ;;  %v1030_v8 = vld [vmem:[%s5319_s6] sm:$0xff] }
 0x1b6   :  { %3598 = vmatmul.mubr.msk.f32.gmra.mrb[6].mxu1 %vm416_vm3, %v521_v52 }
 0x1b7   :  { %3768 = vmatpush3.bf16.msra.mxu1 %v3741_v32  ;;  %3614 = vmatprep.mubr.msk.f32.mxu1 %vm416_vm3, %v620_v53 }
 0x1b8   :  { %3770 = vmatprep.subr.bf16.mxu1 %v3745_v43 }
 0x1bb   :  { %3772 = vmatpush3.bf16.msra.mxu1 %v3745_v43 }
 0x1bc   :  { %3612 = vmatprep.subr.msk.mxu1 %vm384_vm7, %v411_v41 }
 0x1bf   :  { %3613 = vmatpush3.msk.msra.mxu1 %vm384_vm7, %v411_v41  ;;  %vm897_vm7 = vcmask 261120   ;;  %v4283_v41 = vmov 0.0|0.0  }
 0x1c0   :  { %3615 = vmatmul.mubr.msk.f32.vlgmr.msra.gmra.mrb[8].mxu1 %vm416_vm3, %v621_v54  ;;  %3786 = vmatprep.subr.bf16.mxu1 %v3785_v4 }
 0x1c1   :  { %3617 = vmatprep.mubr.msk.f32.mxu1 %vm416_vm3, %v622_v55  ;;  %3788 = vmatpush3.bf16.msra.mxu1 %v3785_v4 }
 0x1c2   :  { %3790 = vmatprep.subr.bf16.mxu1 %v3789_v9  ;;  %3797 = vmatprep.subr.bf16.mxu0 %v4283_v41 }
 0x1c4   :  { %3618 = vmatmul.mubr.msk.f32.gmra.mrb[10].mxu1 %vm416_vm3, %v623_v56  ;;  %vm871_vm3 = vcmask 64512  }
 0x1c5   :  { %3792 = vmatpush3.bf16.msra.mxu1 %v3789_v9  ;;  %v3193_v9 = vld [vmem:[%s5319_s6 + $0x8] sm:$0xff] }
 0x1c6   :  { %3793 = vmatprep.subr.bf16.mxu1 %v4283_v41 }
 0x277   :  { %v3576_v57 = vpop.f32.mrb[0].mxu1 }
 0x278   :  { %v498_v58 = vpop.f32.mrb[1].mxu1 }
 0x279   :  { %v3636_v59 = vpop.f32.mrb[26].mxu0 }
 0x27a   :  { %v804_v60 = vpop.f32.mrb[27].mxu0  ;;  %861 = vrot.lane.b32.xlu1 %v3636_v59, %s4281_s1 }
 0x27b   :  { %859 = vrot.lane.b32.xlu0 %v804_v60, %s4281_s1  ;;  %v3579_v61 = vpop.f32.mrb[2].mxu1 }
 0x27c   :  { %v508_v62 = vpop.f32.mrb[3].mxu1 }
 0x27d   :  { %v3639_v63 = vpop.f32.mrb[28].mxu0 }
 0x27e   :  { %v814_v1 = vpop.f32.mrb[29].mxu0 }
 0x285   :  { %v3596_v5 = vpop.f32.mrb[4].mxu1 }
 0x286   :  { %829 = vrot.lane.b32.xlu0 %v3596_v5, %s4270_s20  ;;  %v600_v6 = vpop.f32.mrb[5].mxu1 }
 0x289   :  { %v3599_v10 = vpop.f32.mrb[6].mxu1 }
 0x28a   :  { %833 = vrot.lane.b32.xlu1 %v3599_v10, %s4270_s20  ;;  %827 = vrot.lane.b32.xlu0 %v600_v6, %s4270_s20  ;;  %v610_v11 = vpop.f32.mrb[7].mxu1  ;;  %v3196_v10 = vld [vmem:[%s5319_s6 + $0x10] sm:$0xff] }
 0x28e   :  { %831 = vrot.lane.b32.xlu0 %v610_v11, %s4270_s20  ;;  %v3199_v11 = vld [vmem:[%s5319_s6 + $0x18] sm:$0xff] }
 0x293   :  { %v3616_v12 = vpop.f32.mrb[8].mxu1 }
 0x294   :  { %845 = vrot.lane.b32.xlu1 %v3616_v12, %s4282_s24  ;;  %v702_v13 = vpop.f32.mrb[9].mxu1  ;;  %v1350_v12 = vld [vmem:[%s5320_s7] sm:$0xff] }
 0x297   :  { %v3619_v14 = vpop.f32.mrb[10].mxu1 }
 0x298   :  { %v712_v15 = vpop.f32.mrb[11].mxu1  ;;  %843 = vrot.lane.b32.xlu1 %v702_v13, %s4282_s24  ;;  %v1351_v13 = vld [vmem:[%s5320_s7 + $0x8] sm:$0xff] }
 0x299   :  { %847 = vrot.lane.b32.xlu0 %v712_v15, %s4282_s24  ;;  %v3810_v15 = vpack.c.bf16 %v1351_v13, %v1350_v12  ;;  %v1485_v12 = vld [vmem:[%s5322_s9 + $0xe0] sm:$0xff] }
 0x29c   :  { %849 = vrot.lane.b32.xlu1 %v3619_v14, %s4282_s24  ;;  %v1352_v14 = vld [vmem:[%s5320_s7 + $0x10] sm:$0xff] }
 0x29d   :  { %863 = vrot.lane.b32.xlu0 %v814_v1, %s4281_s1 }
 0x2a0   :  { %865 = vrot.lane.b32.xlu1 %v3639_v63, %s4281_s1 }
 0x2ec   :  { %v862_v18 = vpop.permute.xlu1 %861 }
 0x2ed   :  { %v860_v16 = vpop.permute.xlu0 %859 }
 0x2f8   :  { %v830_v17 = vpop.permute.xlu0 %829 }
 0x2f9   :  { %v873_v23 = vsel %vm871_vm3, %v3576_v57, %v830_v17 }
 0x2fc   :  { %v828_v19 = vpop.permute.xlu0 %827  ;;  %v834_v20 = vpop.permute.xlu1 %833 }
 0x2fd   :  { %v872_v24 = vsel %vm871_vm3, %v498_v58, %v828_v19  ;;  %v875_v27 = vsel %vm871_vm3, %v3579_v61, %v834_v20  ;;  %v1355_v19 = vld [vmem:[%s5320_s7 + $0x28] sm:$0xff] }
 0x300   :  { %v832_v22 = vpop.permute.xlu0 %831 }
 0x301   :  { %v874_v33 = vsel %vm871_vm3, %v508_v62, %v832_v22  ;;  %v1357_v22 = vld [vmem:[%s5320_s7 + $0x38] sm:$0xff] }
 0x306   :  { %v846_v21 = vpop.permute.xlu1 %845 }
 0x307   :  { %v878_v25 = vsel %vm876_vm5, %v873_v23, %v846_v21  ;;  %v1356_v21 = vld [vmem:[%s5320_s7 + $0x30] sm:$0xff] }
 0x308   :  { %v883_v32 = vsel %vm881_vm6, %v878_v25, %v862_v18  ;;  %v1354_v18 = vld [vmem:[%s5320_s7 + $0x20] sm:$0xff]  ;;  %v3819_v23 = vpack.c.bf16 %v1357_v22, %v1356_v21  ;;  %v1359_v25 = vld [vmem:[%s5320_s7 + $0x48] sm:$0xff] }
 0x309   :  { %v3816_v20 = vpack.c.bf16 %v1355_v19, %v1354_v18  ;;  %v1458_v19 = vld [vmem:[%s5322_s9 + $0x8] sm:$0xff] }
 0x30a   :  { %v844_v26 = vpop.permute.xlu1 %843 }
 0x30b   :  { %v877_v28 = vsel %vm876_vm5, %v872_v24, %v844_v26  ;;  %v848_v30 = vpop.permute.xlu0 %847  ;;  %v1358_v24 = vld [vmem:[%s5320_s7 + $0x40] sm:$0xff] }
 0x30c   :  { %v882_v31 = vsel %vm881_vm6, %v877_v28, %v860_v16  ;;  %v879_v35 = vsel %vm876_vm5, %v874_v33, %v848_v30  ;;  %v1353_v16 = vld [vmem:[%s5320_s7 + $0x18] sm:$0xff]  ;;  %v3822_v26 = vpack.c.bf16 %v1359_v25, %v1358_v24  ;;  %v1360_v28 = vld [vmem:[%s5320_s7 + $0x50] sm:$0xff]  ;;  %v1363_v33 = vld [vmem:[%s5320_s7 + $0x68] sm:$0xff] }
 0x30d   :  { %3648 = vmatprep.mubr.msk.f32.mxu1 %vm897_vm7, %v882_v31  ;;  %v3813_v17 = vpack.c.bf16 %v1353_v16, %v1352_v14  ;;  %v1361_v30 = vld [vmem:[%s5320_s7 + $0x58] sm:$0xff]  ;;  %v1483_v14 = vld [vmem:[%s5322_s9 + $0xd0] sm:$0xff]  ;;  %v3880_v24 = vld [vmem:[%s5324_s11 + $0x104] ss:$8 sps:$4 sm:$0xff]  }
 0x30e   :  { %v850_v34 = vpop.permute.xlu1 %849  ;;  %3649 = vmatmul.mubr.msk.f32.vlgmr.msra.gmra.mrb[12].mxu1 %vm897_vm7, %v883_v32  ;;  %v3825_v31 = vpack.c.bf16 %v1361_v30, %v1360_v28  ;;  %v1362_v32 = vld [vmem:[%s5320_s7 + $0x60] sm:$0xff] }
 0x30f   :  { %v864_v36 = vpop.permute.xlu0 %863  ;;  %v880_v39 = vsel %vm876_vm5, %v875_v27, %v850_v34  ;;  %v3828_v34 = vpack.c.bf16 %v1363_v33, %v1362_v32  ;;  %v1457_v27 = vld [vmem:[%s5322_s9] sm:$0xff] }
 0x310   :  { %v884_v37 = vsel %vm881_vm6, %v879_v35, %v864_v36  ;;  %v1364_v35 = vld [vmem:[%s5320_s7 + $0x70] sm:$0xff]  ;;  %v1365_v36 = vld [vmem:[%s5320_s7 + $0x78] sm:$0xff]  ;;  %s4286_s7 = smov 96   ;;  %v3202_v25 = vld [vmem:[#allocation8] ss:$0 sm:$0xff] }
 0x311   :  { %3651 = vmatprep.mubr.msk.f32.mxu1 %vm897_vm7, %v884_v37  ;;  %v3831_v37 = vpack.c.bf16 %v1365_v36, %v1364_v35 }
 0x312   :  { %v866_v40 = vpop.permute.xlu1 %865 }
 0x313   :  { %v885_v29 = vsel %vm881_vm6, %v880_v39, %v866_v40  ;;  %v1461_v39 = vld [vmem:[%s5322_s9 + $0x20] sm:$0xff] }
 0x314   :  { %3652 = vmatmul.mubr.msk.f32.gmra.mrb[14].mxu1 %vm897_vm7, %v885_v29  ;;  %v3203_v40 = vcombine.low %v1457_v27, %v1461_v39  ;;  %v3204_v29 = vcombine.high %v1457_v27, %v1461_v39  ;;  %v1466_v27 = vld [vmem:[%s5322_s9 + $0x48] sm:$0xff] }
 0x315   :  { %3658 = vmatprep.mubr.msk.f32.mxu1 %vm4280_vm0, %v4279_v0  ;;  %v1470_v39 = vld [vmem:[%s5322_s9 + $0x68] sm:$0xff] }
 0x3e1   :  { %v3650_v43 = vpop.f32.mrb[12].mxu1 }
 0x3e2   :  { %v976_v44 = vpop.f32.mrb[13].mxu1  ;;  %v982_v45 = vadd.f32 %v3650_v43, %v3186_v42 }
 0x3e3   :  { %v977_v47 = vadd.f32 %v3186_v42, %v976_v44 }
 0x3e4   :  { %v1000_v46 = vmul.f32 0.01, %v982_v45  ;;  %vm996_vm8 = vcmp.gt.f32.partialorder %v982_v45, 0.0 }
 0x3e5   :  { %v999_v54 = vmul.f32 0.01, %v977_v47  ;;  %vm995_vm11 = vcmp.gt.f32.partialorder %v977_v47, 0.0 }
 0x3e6   :  { %v1004_v52 = vsel %vm996_vm8, %v982_v45, %v1000_v46 }
 0x3e7   :  { %v3653_v38 = vpop.f32.mrb[14].mxu1  ;;  %v1011_v58 = vrot.slane %v1004_v52, 6  ;;  %v1003_v60 = vsel %vm995_vm11, %v977_v47, %v999_v54  ;;  %v1459_v54 = vld [vmem:[%s5322_s9 + $0x10] sm:$0xff] }
 0x3e8   :  { %v992_v48 = vadd.f32 %v3653_v38, %v3186_v42  ;;  %v986_v49 = vpop.f32.mrb[15].mxu1 }
 0x3e9   :  { %v987_v50 = vadd.f32 %v3186_v42, %v986_v49 }
 0x3ea   :  { %vm998_vm9 = vcmp.gt.f32.partialorder %v992_v48, 0.0  ;;  %v1002_v51 = vmul.f32 0.01, %v992_v48 }
 0x3eb   :  { %vm997_vm10 = vcmp.gt.f32.partialorder %v987_v50, 0.0  ;;  %v1001_v53 = vmul.f32 0.01, %v987_v50 }
 0x3ec   :  { %v1006_v55 = vsel %vm998_vm9, %v992_v48, %v1002_v51 }
 0x3ed   :  { %v1014_v56 = vrot.slane %v1006_v55, 6  ;;  %v1005_v57 = vsel %vm997_vm10, %v987_v50, %v1001_v53  ;;  %v1463_v55 = vld [vmem:[%s5322_s9 + $0x30] sm:$0xff] }
 0x3ee   :  { %v1012_v59 = vrot.slane %v1005_v57, 6  ;;  %v3207_v57 = vcombine.low %v1459_v54, %v1463_v55 }
 0x3f0   :  { %v1013_v61 = vsel %vm1010_vm12, %v1011_v58, %v1012_v59  ;;  %v1015_v62 = vsel %vm1010_vm12, %v1012_v59, %v1014_v56  ;;  %v3208_v56 = vcombine.high %v1459_v54, %v1463_v55  ;;  %v1465_v58 = vld [vmem:[%s5322_s9 + $0x40] sm:$0xff]  ;;  %v1460_v54 = vld [vmem:[%s5322_s9 + $0x18] sm:$0xff] }
 0x3f1   :  { %v1018_v63 = vmax.f32 %v1003_v60, %v1013_v61  ;;  %v1019_v1 = vmax.f32 %v1004_v52, %v1015_v62  ;;  %v1469_v59 = vld [vmem:[%s5322_s9 + $0x60] sm:$0xff]  ;;  %v1467_v61 = vld [vmem:[%s5322_s9 + $0x50] sm:$0xff]  ;;  %v1464_v55 = vld [vmem:[%s5322_s9 + $0x38] sm:$0xff] }
 0x3f2   :  { %v3212_v60 = vcombine.high %v1465_v58, %v1469_v59  ;;  %v1471_v62 = vld [vmem:[%s5322_s9 + $0x70] sm:$0xff] }
 0x3f3   :  { %v1023_v2 = vrot.slane %v1018_v63, 1  ;;  %v1024_v3 = vrot.slane %v1019_v1, 1 }
 0x3f5   :  { %v1025_v4 = vsel %vm1022_vm13, %v1023_v2, %v1024_v3  ;;  %v1029_v5 = vmax.f32 %v1019_v1, %v1024_v3  ;;  %v3216_v1 = vcombine.high %v1467_v61, %v1471_v62  ;;  %v3215_v2 = vcombine.low %v1467_v61, %v1471_v62  ;;  %v1473_v3 = vld [vmem:[%s5322_s9 + $0x80] sm:$0xff]  ;;  %v1472_v61 = vld [vmem:[%s5322_s9 + $0x78] sm:$0xff] }
 0x3f6   :  { %v1028_v6 = vmax.f32 %v1018_v63, %v1025_v4  ;;  %v3211_v63 = vcombine.low %v1465_v58, %v1469_v59  ;;  %v1477_v4 = vld [vmem:[%s5322_s9 + $0xa0] sm:$0xff]  ;;  %v3210_v58 = vcombine.high %v1460_v54, %v1464_v55  ;;  %v3896_v59 = vld [vmem:[%s5324_s11 + $0x130] ss:$8 sps:$4 sm:$0xff]  }
 0x3f7   :  { %v3904_v62 = vld [vmem:[%s5324_s11 + $0x144] ss:$8 sps:$4 sm:$0xff]  }
 0x3f8   :  { %v3794_v7 = vpack.c.bf16 %v1029_v5, %v1028_v6  ;;  %v3220_v5 = vcombine.high %v1473_v3, %v1477_v4  ;;  %v1475_v6 = vld [vmem:[%s5322_s9 + $0x90] sm:$0xff] }
 0x3fa   :  { %3796 = vmatpush3.bf16.msk.msra.mxu1 %vm3795_vm15, %v3794_v7  ;;  %3800 = vmatpush3.bf16.msk.msra.mxu0 %vm3795_vm15, %v3794_v7 }
 0x3fb   :  { %3801 = vmatprep.subr.bf16.mxu1 %v4283_v41  ;;  %3805 = vmatprep.subr.bf16.mxu0 %v4283_v41 }
 0x3fd   :  { %3659 = vmatmul.mubr.msk.f32.vlgmr.msra.gmra.mrb[16].mxu1 %vm1031_vm2, %v1030_v8  ;;  %3666 = vmatmul.mubr.msk.f32.vlgmr.msra.gmra.mrb[30].mxu0 %vm1031_vm2, %v3193_v9  ;;  %v3219_v8 = vcombine.low %v1473_v3, %v1477_v4  ;;  %v1476_v3 = vld [vmem:[%s5322_s9 + $0x98] sm:$0xff] }
 0x3fe   :  { %3804 = vmatpush3.bf16.msk.msra.mxu1 %vm3795_vm15, %v3794_v7  ;;  %3808 = vmatpush3.bf16.msk.msra.mxu0 %vm3795_vm15, %v3794_v7  ;;  %v1479_v7 = vld [vmem:[%s5322_s9 + $0xb0] sm:$0xff]  ;;  %v1480_v4 = vld [vmem:[%s5322_s9 + $0xb8] sm:$0xff] }
 0x3ff   :  { %3672 = vmatprep.mubr.msk.f32.mxu1 %vm4280_vm0, %v4279_v0  ;;  %3679 = vmatprep.mubr.msk.f32.mxu0 %vm4280_vm0, %v4279_v0  ;;  %v3224_v9 = vcombine.high %v1475_v6, %v1479_v7 }
 0x400   :  { %3809 = vmatprep.subr.bf16.mxu0 %v4283_v41  ;;  %1776 = vmatprep.subr.bf16.mxu1 %v3208_v56  ;;  %v3898_v56 = vld [vmem:[%s5324_s11 + $0x134] ss:$8 sps:$4 sm:$0xff]  }
 0x401   :  { %3673 = vmatmul.mubr.msk.f32.vlgmr.msra.gmra.mrb[18].mxu1 %vm1031_vm2, %v3196_v10  ;;  %3680 = vmatmul.mubr.msk.f32.vlgmr.msra.gmra.mrb[32].mxu0 %vm1031_vm2, %v3199_v11  ;;  %v3223_v10 = vcombine.low %v1475_v6, %v1479_v7  ;;  %v1481_v11 = vld [vmem:[%s5322_s9 + $0xc0] sm:$0xff]  ;;  %v3226_v7 = vcombine.high %v1476_v3, %v1480_v4 }
 0x402   :  { %3714 = vmatprep.mubr.msk.f32.mxu0 %vm4280_vm0, %v4279_v0  ;;  %3811 = vmatpush3.bf16.msra.mxu0 %v3810_v15  ;;  %v3228_v13 = vcombine.high %v1481_v11, %v1485_v12  ;;  %v1487_v15 = vld [vmem:[%s5322_s9 + $0xf0] sm:$0xff]  ;;  %v3227_v16 = vcombine.low %v1481_v11, %v1485_v12  ;;  %v3916_v11 = vld [vmem:[%s5324_s11 + $0x164] ss:$8 sps:$4 sm:$0xff]   ;;  %v3225_v12 = vcombine.low %v1476_v3, %v1480_v4  ;;  %v1491_v4 = vlaneseq }
 0x403   :  { %3812 = vmatprep.subr.bf16.mxu0 %v4283_v41  ;;  %1777 = vmatpush1.bf16.msra.mxu1 %v3207_v57  ;;  %v3231_v18 = vcombine.low %v1483_v14, %v1487_v15  ;;  %v3964_v3 = vld [vmem:[%s5324_s11 + $0x204] ss:$8 sps:$4 sm:$0xff]  }
 0x404   :  { %1778 = vmatprep.subr.bf16.mxu1 %v3216_v1 }
 0x406   :  { %3814 = vmatpush3.bf16.msra.mxu0 %v3813_v17  ;;  %v3232_v17 = vcombine.high %v1483_v14, %v1487_v15  ;;  %v3914_v14 = vld [vmem:[%s5324_s11 + $0x160] ss:$8 sps:$4 sm:$0xff]   ;;  %v3922_v15 = vld [vmem:[%s5324_s11 + $0x174] ss:$8 sps:$4 sm:$0xff]  }
 0x407   :  { %3815 = vmatprep.subr.bf16.mxu0 %v4283_v41  ;;  %1779 = vmatpush1.bf16.msra.mxu1 %v3215_v2  ;;  %v3902_v2 = vld [vmem:[%s5324_s11 + $0x140] ss:$8 sps:$4 sm:$0xff]  }
 0x408   :  { %1780 = vmatprep.subr.bf16.mxu1 %v3224_v9  ;;  %v1484_v9 = vld [vmem:[%s5322_s9 + $0xd8] sm:$0xff] }
 0x40a   :  { %3817 = vmatpush3.bf16.msra.mxu0 %v3816_v20  ;;  %v1462_v20 = vld [vmem:[%s5322_s9 + $0x28] sm:$0xff] }
 0x40b   :  { %3818 = vmatprep.subr.bf16.mxu0 %v4283_v41  ;;  %1781 = vmatpush1.bf16.msra.mxu1 %v3223_v10  ;;  %v3206_v21 = vcombine.high %v1458_v19, %v1462_v20  ;;  %v3205_v22 = vcombine.low %v1458_v19, %v1462_v20  ;;  %v1488_v10 = vld [vmem:[%s5322_s9 + $0xf8] sm:$0xff]  ;;  %v3928_v19 = vld [vmem:[%s5324_s11 + $0x184] ss:$8 sps:$4 sm:$0xff]   ;;  %v3866_v20 = vld [vmem:[%s5324_s11] ss:$8 sps:$4 sm:$0xff]  }
 0x40c   :  { %1782 = vmatprep.subr.bf16.mxu1 %v3232_v17  ;;  %v3868_v17 = vld [vmem:[%s5324_s11 + $0x4] ss:$8 sps:$4 sm:$0xff]  }
 0x40e   :  { %3820 = vmatpush3.bf16.msra.mxu0 %v3819_v23  ;;  %v4287_v23 = vmov 0  }
 0x40f   :  { %3821 = vmatprep.subr.bf16.mxu0 %v4283_v41  ;;  %1783 = vmatpush1.bf16.msra.mxu1 %v3231_v18  ;;  %v3920_v18 = vld [vmem:[%s5324_s11 + $0x170] ss:$8 sps:$4 sm:$0xff]  }
 0x410   :  { %1808 = vmatprep.mubr.bf16.mxu1 %v4287_v23  ;;  %2711 = vmatprep.subr.bf16.mxu1 %v3880_v24  ;;  %v3869_v24 = vld [vmem:[%s5324_s11 + $0x10] ss:$8 sps:$4 sm:$0xff]  }
 0x412   :  { %3823 = vmatpush3.bf16.msra.mxu0 %v3822_v26 }
 0x413   :  { %3824 = vmatprep.subr.bf16.mxu0 %v4283_v41 }
 0x416   :  { %3826 = vmatpush3.bf16.msra.mxu0 %v3825_v31 }
 0x417   :  { %3827 = vmatprep.subr.bf16.mxu0 %v4283_v41 }
 0x41a   :  { %3829 = vmatpush3.bf16.msra.mxu0 %v3828_v34 }
 0x41b   :  { %3830 = vmatprep.subr.bf16.mxu0 %v4283_v41 }
 0x41e   :  { %3832 = vmatpush3.bf16.msra.mxu0 %v3831_v37 }
 0x41f   :  { %1694 = vmatprep.subr.bf16.mxu0 %v3204_v29 }
 0x4d0   :  { %v1179_v41 = vpop.f32.mrb[30].mxu0  ;;  %v1104_v42 = vpop.f32.mrb[16].mxu1 }
 0x4d1   :  { %1334 = vrot.lane.b32.xlu0 %v1179_v41, %s4285_s29  ;;  %v3660_v43 = vpop.f32.mrb[17].mxu1  ;;  %v3667_v44 = vpop.f32.mrb[31].mxu0  ;;  %v3214_v41 = vcombine.high %v1466_v27, %v1470_v39 }
 0x4d2   :  { %v1474_v43 = vld [vmem:[%s5322_s9 + $0x88] sm:$0xff] }
 0x4d3   :  { %v1478_v44 = vld [vmem:[%s5322_s9 + $0xa8] sm:$0xff] }
 0x4d4   :  { %v1254_v45 = vpop.f32.mrb[18].mxu1  ;;  %v1329_v46 = vpop.f32.mrb[32].mxu0 }
 0x4d5   :  { %1338 = vrot.lane.b32.xlu1 %v1254_v45, %s4273_s8  ;;  %1342 = vrot.lane.b32.xlu0 %v1329_v46, %s4286_s7  ;;  %v3674_v38 = vpop.f32.mrb[19].mxu1  ;;  %v3681_v47 = vpop.f32.mrb[33].mxu0  ;;  %v3886_v45 = vld [vmem:[%s5324_s11 + $0x114] ss:$8 sps:$4 sm:$0xff]   ;;  %v3213_v46 = vcombine.low %v1466_v27, %v1470_v39  ;;  %v3899_v39 = vld [vmem:[%s5324_s11 + $0x70] ss:$8 sps:$4 sm:$0xff]  }
 0x4d6   :  { %v3222_v38 = vcombine.high %v1474_v43, %v1478_v44  ;;  %v3884_v47 = vld [vmem:[%s5324_s11 + $0x110] ss:$8 sps:$4 sm:$0xff]   ;;  %v3901_v27 = vld [vmem:[%s5324_s11 + $0x74] ss:$8 sps:$4 sm:$0xff]  }
 0x543   :  { %v1335_v48 = vpop.permute.xlu0 %1334 }
 0x544   :  { %v1345_v49 = vsel %vm897_vm7, %v1104_v42, %v1335_v48  ;;  %v3878_v42 = vld [vmem:[%s5324_s11 + $0x100] ss:$8 sps:$4 sm:$0xff]  }
 0x545   :  { %v1482_v48 = vld [vmem:[%s5322_s9 + $0xc8] sm:$0xff] }
 0x547   :  { %v1339_v50 = vpop.permute.xlu1 %1338  ;;  %v1343_v51 = vpop.permute.xlu0 %1342 }
 0x548   :  { %v1347_v52 = vsel %vm1346_vm1, %v1345_v49, %v1339_v50  ;;  %v1486_v49 = vld [vmem:[%s5322_s9 + $0xe8] sm:$0xff] }
 0x549   :  { %v1349_v53 = vsel %vm1348_vm4, %v1347_v52, %v1343_v51  ;;  %v3892_v50 = vld [vmem:[%s5324_s11 + $0x124] ss:$8 sps:$4 sm:$0xff]   ;;  %v3221_v51 = vcombine.low %v1474_v43, %v1478_v44  ;;  %v3230_v52 = vcombine.high %v1482_v48, %v1486_v49  ;;  %v3229_v57 = vcombine.low %v1482_v48, %v1486_v49  ;;  %v3917_v44 = vld [vmem:[%s5324_s11 + $0xa0] ss:$8 sps:$4 sm:$0xff]   ;;  %v3937_v48 = vld [vmem:[%s5324_s11 + $0xd4] ss:$8 sps:$4 sm:$0xff]  }
 0x54a   :  { %3715 = vmatmul.mubr.f32.vlgmr.msra.gmra.mrb[34].mxu0 %v1349_v53  ;;  %v3890_v53 = vld [vmem:[%s5324_s11 + $0x120] ss:$8 sps:$4 sm:$0xff]   ;;  %v3919_v43 = vld [vmem:[%s5324_s11 + $0xa4] ss:$8 sps:$4 sm:$0xff]   ;;  %v3935_v49 = vld [vmem:[%s5324_s11 + $0xd0] ss:$8 sps:$4 sm:$0xff]  }
 0x54b   :  { %1695 = vmatpush1.bf16.msra.mxu0 %v3203_v40  ;;  %1726 = vmatprep.mubr.bf16.mxu0 %v4287_v23 }
 0x54c   :  { %1696 = vmatprep.subr.bf16.mxu0 %v3212_v60  ;;  %v1468_v60 = vld [vmem:[%s5322_s9 + $0x58] sm:$0xff] }
 0x54d   :  { %v3218_v1 = vcombine.high %v1468_v60, %v1472_v61  ;;  %v3217_v6 = vcombine.low %v1468_v60, %v1472_v61  ;;  %v3955_v60 = vld [vmem:[%s5324_s11 + $0x1d4] ss:$8 sps:$4 sm:$0xff]   ;;  %v3953_v61 = vld [vmem:[%s5324_s11 + $0x1d0] ss:$8 sps:$4 sm:$0xff]  }
 0x54f   :  { %1697 = vmatpush1.bf16.msra.mxu0 %v3211_v63  ;;  %v3209_v63 = vcombine.low %v1460_v54, %v1464_v55  ;;  %v3946_v54 = vld [vmem:[%s5324_s11 + $0x1b4] ss:$8 sps:$4 sm:$0xff]   ;;  %v3944_v55 = vld [vmem:[%s5324_s11 + $0x1b0] ss:$8 sps:$4 sm:$0xff]  }
 0x550   :  { %1698 = vmatprep.subr.bf16.mxu0 %v3220_v5  ;;  %v3910_v5 = vld [vmem:[%s5324_s11 + $0x154] ss:$8 sps:$4 sm:$0xff]  }
 0x553   :  { %1699 = vmatpush1.bf16.msra.mxu0 %v3219_v8  ;;  %v3908_v8 = vld [vmem:[%s5324_s11 + $0x150] ss:$8 sps:$4 sm:$0xff]  }
 0x554   :  { %1700 = vmatprep.subr.bf16.mxu0 %v3228_v13  ;;  %v3234_v13 = vcombine.high %v1484_v9, %v1488_v10 }
 0x557   :  { %1701 = vmatpush1.bf16.msra.mxu0 %v3227_v16  ;;  %v3233_v16 = vcombine.low %v1484_v9, %v1488_v10 }
 0x558   :  { %1735 = vmatprep.subr.bf16.mxu0 %v3206_v21  ;;  %v3871_v21 = vld [vmem:[%s5324_s11 + $0x14] ss:$8 sps:$4 sm:$0xff]  }
 0x61d   :  { %v1439_v26 = vpop.f32.mrb[34].mxu0 }
 0x61e   :  { %v1440_v28 = vadd.f32 %v3202_v25, %v1439_v26  ;;  %v3716_v30 = vpop.f32.mrb[35].mxu0  ;;  %v3874_v25 = vld [vmem:[%s5324_s11 + $0x24] ss:$8 sps:$4 sm:$0xff]   ;;  %v3932_v26 = vld [vmem:[%s5324_s11 + $0x190] ss:$8 sps:$4 sm:$0xff]  }
 0x61f   :  { %v3877_v30 = vld [vmem:[%s5324_s11 + $0x34] ss:$8 sps:$4 sm:$0xff]  }
 0x620   :  { %vm1443_vm3 = vcmp.gt.f32.partialorder %v1440_v28, 0.0  ;;  %v1444_v31 = vmul.f32 0.01, %v1440_v28 }
 0x622   :  { %v1445_v32 = vsel %vm1443_vm3, %v1440_v28, %v1444_v31  ;;  %v3872_v28 = vld [vmem:[%s5324_s11 + $0x20] ss:$8 sps:$4 sm:$0xff]   ;;  %v3875_v31 = vld [vmem:[%s5324_s11 + $0x30] ss:$8 sps:$4 sm:$0xff]  }
 0x623   :  { %v1447_v33 = vrot.slane %v1445_v32, 2  ;;  %v1450_v35 = vrot.slane %v1445_v32, 4  ;;  %v1453_v37 = vrot.slane %v1445_v32, 6 }
 0x625   :  { %v1449_v34 = vmax.f32 %v1445_v32, %v1447_v33  ;;  %v3883_v32 = vld [vmem:[%s5324_s11 + $0x44] ss:$8 sps:$4 sm:$0xff]   ;;  %v3881_v33 = vld [vmem:[%s5324_s11 + $0x40] ss:$8 sps:$4 sm:$0xff]  }
 0x627   :  { %v1452_v36 = vmax.f32 %v1449_v34, %v1450_v35  ;;  %v3889_v34 = vld [vmem:[%s5324_s11 + $0x54] ss:$8 sps:$4 sm:$0xff]   ;;  %v3887_v35 = vld [vmem:[%s5324_s11 + $0x50] ss:$8 sps:$4 sm:$0xff]  }
 0x629   :  { %v1455_v40 = vmax.f32 %v1452_v36, %v1453_v37  ;;  %v3895_v36 = vld [vmem:[%s5324_s11 + $0x64] ss:$8 sps:$4 sm:$0xff]   ;;  %v3893_v37 = vld [vmem:[%s5324_s11 + $0x60] ss:$8 sps:$4 sm:$0xff]  }
 0x62b   :  { %v4798_v29 = vpack.c.bf16 %v1455_v40, %v1455_v40  ;;  %v3907_v40 = vld [vmem:[%s5324_s11 + $0x84] ss:$8 sps:$4 sm:$0xff]  }
 0x62d   :  { %3235 = vmatmul.mubr.msk.bf16.vlgmr.msra.gmra.mrb[36].mxu0 %vm1346_vm1, %v4798_v29  ;;  %3237 = vmatmul.mubr.msk.bf16.vlgmr.msra.gmra.mrb[20].mxu1 %vm1346_vm1, %v4798_v29 }
 0x62e   :  { %1736 = vmatpush1.bf16.msra.mxu0 %v3205_v22  ;;  %1767 = vmatprep.mubr.bf16.mxu0 %v4287_v23  ;;  %v3926_v22 = vld [vmem:[%s5324_s11 + $0x180] ss:$8 sps:$4 sm:$0xff]  }
 0x62f   :  { %1737 = vmatprep.subr.bf16.mxu0 %v3214_v41  ;;  %2712 = vmatpush1.bf16.msra.mxu1 %v3878_v42  ;;  %v3913_v41 = vld [vmem:[%s5324_s11 + $0x94] ss:$8 sps:$4 sm:$0xff]   ;;  %v3911_v42 = vld [vmem:[%s5324_s11 + $0x90] ss:$8 sps:$4 sm:$0xff]  }
 0x630   :  { %2713 = vmatprep.subr.bf16.mxu1 %v3886_v45  ;;  %v3925_v45 = vld [vmem:[%s5324_s11 + $0xb4] ss:$8 sps:$4 sm:$0xff]  }
 0x632   :  { %1738 = vmatpush1.bf16.msra.mxu0 %v3213_v46  ;;  %v3923_v46 = vld [vmem:[%s5324_s11 + $0xb0] ss:$8 sps:$4 sm:$0xff]  }
 0x633   :  { %1739 = vmatprep.subr.bf16.mxu0 %v3222_v38  ;;  %2714 = vmatpush1.bf16.msra.mxu1 %v3884_v47  ;;  %v3931_v38 = vld [vmem:[%s5324_s11 + $0xc4] ss:$8 sps:$4 sm:$0xff]   ;;  %v3929_v47 = vld [vmem:[%s5324_s11 + $0xc0] ss:$8 sps:$4 sm:$0xff]  }
 0x634   :  { %2715 = vmatprep.subr.bf16.mxu1 %v3892_v50  ;;  %v3940_v50 = vld [vmem:[%s5324_s11 + $0x1a4] ss:$8 sps:$4 sm:$0xff]  }
 0x636   :  { %1740 = vmatpush1.bf16.msra.mxu0 %v3221_v51  ;;  %v3938_v51 = vld [vmem:[%s5324_s11 + $0x1a0] ss:$8 sps:$4 sm:$0xff]  }
 0x637   :  { %1741 = vmatprep.subr.bf16.mxu0 %v3230_v52  ;;  %2716 = vmatpush1.bf16.msra.mxu1 %v3890_v53  ;;  %v3943_v52 = vld [vmem:[%s5324_s11 + $0xe4] ss:$8 sps:$4 sm:$0xff]   ;;  %v3941_v53 = vld [vmem:[%s5324_s11 + $0xe0] ss:$8 sps:$4 sm:$0xff]  }
 0x638   :  { %2717 = vmatprep.subr.bf16.mxu1 %v3898_v56  ;;  %v3947_v56 = vld [vmem:[%s5324_s11 + $0xf0] ss:$8 sps:$4 sm:$0xff]  }
 0x63a   :  { %1742 = vmatpush1.bf16.msra.mxu0 %v3229_v57  ;;  %v3949_v57 = vld [vmem:[%s5324_s11 + $0xf4] ss:$8 sps:$4 sm:$0xff]  }
 0x63b   :  { %1817 = vmatprep.subr.bf16.mxu0 %v3210_v58  ;;  %2718 = vmatpush1.bf16.msra.mxu1 %v3896_v59  ;;  %v3950_v58 = vld [vmem:[%s5324_s11 + $0x1c0] ss:$8 sps:$4 sm:$0xff]   ;;  %v3952_v59 = vld [vmem:[%s5324_s11 + $0x1c4] ss:$8 sps:$4 sm:$0xff]  }
 0x63c   :  { %2719 = vmatprep.subr.bf16.mxu1 %v3904_v62  ;;  %v3958_v62 = vld [vmem:[%s5324_s11 + $0x1e4] ss:$8 sps:$4 sm:$0xff]  }
 0x63d   :  { %3236 = vmatmul.mubr.msk.bf16.vlgmr.msra.gmra.mrb[40].mxu0 %vm1346_vm1, %v4798_v29 }
 0x63e   :  { %1818 = vmatpush1.bf16.msra.mxu0 %v3209_v63  ;;  %1849 = vmatprep.mubr.bf16.mxu0 %v4287_v23  ;;  %v3934_v23 = vld [vmem:[%s5324_s11 + $0x194] ss:$8 sps:$4 sm:$0xff]   ;;  %v3956_v63 = vld [vmem:[%s5324_s11 + $0x1e0] ss:$8 sps:$4 sm:$0xff]  }
 0x63f   :  { %1819 = vmatprep.subr.bf16.mxu0 %v3218_v1  ;;  %2720 = vmatpush1.bf16.msra.mxu1 %v3902_v2  ;;  %v3961_v1 = vld [vmem:[%s5324_s11 + $0x1f4] ss:$8 sps:$4 sm:$0xff]   ;;  %v3959_v2 = vld [vmem:[%s5324_s11 + $0x1f0] ss:$8 sps:$4 sm:$0xff]  }
 0x640   :  { %2721 = vmatprep.subr.bf16.mxu1 %v3910_v5  ;;  %v5038_v5 = vshrl.u32 %v1491_v4, 7  ;;  %v3983_v4 = vld [vmem:[%s5324_s11 + $0x270] ss:$8 sps:$4 sm:$0xff]  }
 0x642   :  { %1820 = vmatpush1.bf16.msra.mxu0 %v3217_v6  ;;  %v1493_v6 = vsub.s32 0, %v5038_v5 }
 0x643   :  { %1821 = vmatprep.subr.bf16.mxu0 %v3226_v7  ;;  %2722 = vmatpush1.bf16.msra.mxu1 %v3908_v8  ;;  %v5041_v7 = vld [vmem:[#allocation10] sm:$0xff]  ;;  %v1497_v8 = vsub.s32 1, %v5038_v5 }
 0x644   :  { %2723 = vmatprep.subr.bf16.mxu1 %v3916_v11  ;;  %v1494_v9 = vrot.slane %v5041_v7, %v1493_v6 }
 0x645   :  { %v1498_v10 = vrot.slane %v5041_v7, %v1497_v8 }
 0x646   :  { %1822 = vmatpush1.bf16.msra.mxu0 %v3225_v12 }
 0x647   :  { %1823 = vmatprep.subr.bf16.mxu0 %v3234_v13  ;;  %2724 = vmatpush1.bf16.msra.mxu1 %v3914_v14 }
 0x648   :  { %2725 = vmatprep.subr.bf16.mxu1 %v3922_v15 }
 0x64a   :  { %1824 = vmatpush1.bf16.msra.mxu0 %v3233_v16 }
 0x64b   :  { %2670 = vmatprep.subr.bf16.mxu0 %v3868_v17  ;;  %2726 = vmatpush1.bf16.msra.mxu1 %v3920_v18 }
 0x64c   :  { %2727 = vmatprep.subr.bf16.mxu1 %v3928_v19 }
 0x64d   :  { %3238 = vmatmul.mubr.msk.bf16.vlgmr.msra.gmra.mrb[44].mxu0 %vm1346_vm1, %v4798_v29  ;;  %v3905_v29 = vld [vmem:[%s5324_s11 + $0x80] ss:$8 sps:$4 sm:$0xff]  }
 0x64e   :  { %2671 = vmatpush1.bf16.msra.mxu0 %v3866_v20 }
 0x64f   :  { %2672 = vmatprep.subr.bf16.mxu0 %v3871_v21  ;;  %2728 = vmatpush1.bf16.msra.mxu1 %v3926_v22 }
 0x650   :  { %2729 = vmatprep.subr.bf16.mxu1 %v3934_v23 }
 0x652   :  { %2673 = vmatpush1.bf16.msra.mxu0 %v3869_v24  ;;  %v1513_v24 = vsub.s32 5, %v5038_v5 }
 0x653   :  { %2674 = vmatprep.subr.bf16.mxu0 %v3874_v25  ;;  %2730 = vmatpush1.bf16.msra.mxu1 %v3932_v26 }
 0x654   :  { %2731 = vmatprep.subr.bf16.mxu1 %v3940_v50 }
 0x656   :  { %2675 = vmatpush1.bf16.msra.mxu0 %v3872_v28 }
 0x657   :  { %2676 = vmatprep.subr.bf16.mxu0 %v3877_v30  ;;  %2732 = vmatpush1.bf16.msra.mxu1 %v3938_v51  ;;  %v1501_v30 = vsub.s32 2, %v5038_v5  ;;  %v3965_v51 = vld [vmem:[%s5324_s11 + $0x210] ss:$8 sps:$4 sm:$0xff]  }
 0x658   :  { %2733 = vmatprep.subr.bf16.mxu1 %v3946_v54 }
 0x65a   :  { %2677 = vmatpush1.bf16.msra.mxu0 %v3875_v31  ;;  %v1514_v31 = vrot.slane %v5041_v7, %v1513_v24 }
 0x65b   :  { %2678 = vmatprep.subr.bf16.mxu0 %v3883_v32  ;;  %2734 = vmatpush1.bf16.msra.mxu1 %v3944_v55  ;;  %v1505_v32 = vsub.s32 3, %v5038_v5  ;;  %v3973_v55 = vld [vmem:[%s5324_s11 + $0x234] ss:$8 sps:$4 sm:$0xff]  }
 0x65c   :  { %2735 = vmatprep.subr.bf16.mxu1 %v3952_v59  ;;  %v3971_v59 = vld [vmem:[%s5324_s11 + $0x230] ss:$8 sps:$4 sm:$0xff]  }
 0x65e   :  { %2679 = vmatpush1.bf16.msra.mxu0 %v3881_v33  ;;  %v1502_v33 = vrot.slane %v5041_v7, %v1501_v30 }
 0x65f   :  { %2680 = vmatprep.subr.bf16.mxu0 %v3889_v34  ;;  %2736 = vmatpush1.bf16.msra.mxu1 %v3950_v58 }
 0x660   :  { %2737 = vmatprep.subr.bf16.mxu1 %v3955_v60  ;;  %v3976_v60 = vld [vmem:[%s5324_s11 + $0x244] ss:$8 sps:$4 sm:$0xff]  }
 0x662   :  { %2681 = vmatpush1.bf16.msra.mxu0 %v3887_v35  ;;  %v1506_v35 = vrot.slane %v5041_v7, %v1505_v32  ;;  %v4009_v32 = vld [vmem:[%s5324_s11 + $0x2f4] ss:$8 sps:$4 sm:$0xff]  }
 0x663   :  { %2682 = vmatprep.subr.bf16.mxu0 %v3895_v36  ;;  %2738 = vmatpush1.bf16.msra.mxu1 %v3953_v61  ;;  %v3974_v61 = vld [vmem:[%s5324_s11 + $0x240] ss:$8 sps:$4 sm:$0xff]  }
 0x664   :  { %2739 = vmatprep.subr.bf16.mxu1 %v3958_v62  ;;  %v3979_v62 = vld [vmem:[%s5324_s11 + $0x254] ss:$8 sps:$4 sm:$0xff]  }
 0x666   :  { %2683 = vmatpush1.bf16.msra.mxu0 %v3893_v37 }
 0x667   :  { %2684 = vmatprep.subr.bf16.mxu0 %v3901_v27  ;;  %2740 = vmatpush1.bf16.msra.mxu1 %v3956_v63  ;;  %v3977_v63 = vld [vmem:[%s5324_s11 + $0x250] ss:$8 sps:$4 sm:$0xff]  }
 0x668   :  { %2741 = vmatprep.subr.bf16.mxu1 %v3961_v1  ;;  %v3982_v1 = vld [vmem:[%s5324_s11 + $0x264] ss:$8 sps:$4 sm:$0xff]  }
 0x66a   :  { %2685 = vmatpush1.bf16.msra.mxu0 %v3899_v39 }
 0x66b   :  { %2686 = vmatprep.subr.bf16.mxu0 %v3907_v40  ;;  %2742 = vmatpush1.bf16.msra.mxu1 %v3959_v2  ;;  %v3980_v2 = vld [vmem:[%s5324_s11 + $0x260] ss:$8 sps:$4 sm:$0xff]  }
 0x66c   :  { %2752 = vmatprep.subr.bf16.mxu1 %v3964_v3  ;;  %v3985_v3 = vld [vmem:[%s5324_s11 + $0x274] ss:$8 sps:$4 sm:$0xff]  }
 0x66e   :  { %2687 = vmatpush1.bf16.msra.mxu0 %v3905_v29 }
 0x66f   :  { %2688 = vmatprep.subr.bf16.mxu0 %v3913_v41 }
 0x672   :  { %2689 = vmatpush1.bf16.msra.mxu0 %v3911_v42 }
 0x673   :  { %2690 = vmatprep.subr.bf16.mxu0 %v3919_v43 }
 0x676   :  { %2691 = vmatpush1.bf16.msra.mxu0 %v3917_v44 }
 0x677   :  { %2692 = vmatprep.subr.bf16.mxu0 %v3925_v45 }
 0x67a   :  { %2693 = vmatpush1.bf16.msra.mxu0 %v3923_v46 }
 0x67b   :  { %2694 = vmatprep.subr.bf16.mxu0 %v3931_v38 }
 0x67e   :  { %2695 = vmatpush1.bf16.msra.mxu0 %v3929_v47  ;;  %v3962_v47 = vld [vmem:[%s5324_s11 + $0x200] ss:$8 sps:$4 sm:$0xff]  }
 0x67f   :  { %2696 = vmatprep.subr.bf16.mxu0 %v3937_v48 }
 0x682   :  { %2697 = vmatpush1.bf16.msra.mxu0 %v3935_v49  ;;  %v3967_v49 = vld [vmem:[%s5324_s11 + $0x214] ss:$8 sps:$4 sm:$0xff]  }
 0x683   :  { %2698 = vmatprep.subr.bf16.mxu0 %v3943_v52  ;;  %v3970_v52 = vld [vmem:[%s5324_s11 + $0x224] ss:$8 sps:$4 sm:$0xff]  }
 0x686   :  { %2699 = vmatpush1.bf16.msra.mxu0 %v3941_v53  ;;  %v3968_v53 = vld [vmem:[%s5324_s11 + $0x220] ss:$8 sps:$4 sm:$0xff]  }
 0x687   :  { %2700 = vmatprep.subr.bf16.mxu0 %v3949_v57 }
 0x68a   :  { %2701 = vmatpush1.bf16.msra.mxu0 %v3947_v56 }
 0x700   :  { %v1728_v11 = vpop.f32.mrb[36].mxu0  ;;  %v5050_v12 = vpop.f32.mrb[20].mxu1 }
 0x701   :  { %v1729_v13 = vadd.f32 %v1728_v11, %v1494_v9  ;;  %v1730_v14 = vpop.f32.mrb[37].mxu0  ;;  %v1812_v15 = vpop.f32.mrb[21].mxu1  ;;  %v3988_v9 = vld [vmem:[%s5324_s11 + $0x284] ss:$8 sps:$4 sm:$0xff]   ;;  %v3991_v11 = vld [vmem:[%s5324_s11 + $0x294] ss:$8 sps:$4 sm:$0xff]  }
 0x702   :  { %v1731_v16 = vadd.f32 %v1730_v14, %v1498_v10  ;;  %v1732_v17 = vpop.f32.mrb[38].mxu0  ;;  %v1814_v18 = vpop.f32.mrb[22].mxu1  ;;  %v1813_v34 = vadd.f32 %v1812_v15, %v1514_v31  ;;  %v3986_v10 = vld [vmem:[%s5324_s11 + $0x280] ss:$8 sps:$4 sm:$0xff]   ;;  %v3994_v14 = vld [vmem:[%s5324_s11 + $0x2a4] ss:$8 sps:$4 sm:$0xff]  }
 0x703   :  { %vm1858_vm5 = vcmp.gt.f32.partialorder %v1729_v13, 0.0  ;;  %v1866_v19 = vmul.f32 0.01, %v1729_v13  ;;  %v1733_v22 = vpop.f32.mrb[39].mxu0  ;;  %v1815_v23 = vpop.f32.mrb[23].mxu1 }
 0x704   :  { %vm1859_vm6 = vcmp.gt.f32.partialorder %v1731_v16, 0.0  ;;  %v1867_v20 = vmul.f32 0.01, %v1731_v16  ;;  %v1871_v39 = vmul.f32 0.01, %v1813_v34  ;;  %vm1863_vm7 = vcmp.gt.f32.partialorder %v1813_v34, 0.0 }
 0x705   :  { %v1874_v21 = vsel %vm1858_vm5, %v1729_v13, %v1866_v19  ;;  %v3989_v13 = vld [vmem:[%s5324_s11 + $0x290] ss:$8 sps:$4 sm:$0xff]   ;;  %v3992_v15 = vld [vmem:[%s5324_s11 + $0x2a0] ss:$8 sps:$4 sm:$0xff]   ;;  %v4000_v18 = vld [vmem:[%s5324_s11 + $0x2c4] ss:$8 sps:$4 sm:$0xff]  }
 0x706   :  { %v1875_v25 = vsel %vm1859_vm6, %v1731_v16, %v1867_v20  ;;  %v1882_v28 = vpack.c.bf16 %v1874_v21, %v1874_v21  ;;  %v1879_v46 = vsel %vm1863_vm7, %v1813_v34, %v1871_v39  ;;  %v3997_v16 = vld [vmem:[%s5324_s11 + $0x2b4] ss:$8 sps:$4 sm:$0xff]   ;;  %v3995_v17 = vld [vmem:[%s5324_s11 + $0x2b0] ss:$8 sps:$4 sm:$0xff]   ;;  %v1509_v19 = vsub.s32 4, %v5038_v5 }
 0x707   :  { %v1883_v26 = vpack.c.bf16 %v1875_v25, %v1875_v25  ;;  %v1887_v50 = vpack.c.bf16 %v1879_v46, %v1879_v46  ;;  %v1521_v20 = vsub.s32 7, %v5038_v5  ;;  %v3998_v21 = vld [vmem:[%s5324_s11 + $0x2c0] ss:$8 sps:$4 sm:$0xff]   ;;  %v4003_v22 = vld [vmem:[%s5324_s11 + $0x2d4] ss:$8 sps:$4 sm:$0xff]  }
 0x708   :  { %v1510_v23 = vrot.slane %v5041_v7, %v1509_v19  ;;  %v4001_v25 = vld [vmem:[%s5324_s11 + $0x2d0] ss:$8 sps:$4 sm:$0xff]   ;;  %v4004_v31 = vld [vmem:[%s5324_s11 + $0x2e0] ss:$8 sps:$4 sm:$0xff]   ;;  %v4051_v19 = vld [vmem:[%s5324_s11 + $0x3d4] ss:$8 sps:$4 sm:$0xff]  }
 0x709   :  { %2702 = vmatprep.mubr.bf16.mxu0 %v1883_v26  ;;  %v1522_v24 = vrot.slane %v5041_v7, %v1521_v20  ;;  %v4006_v26 = vld [vmem:[%s5324_s11 + $0x2e4] ss:$8 sps:$4 sm:$0xff]  }
 0x70a   :  { %2703 = vmatmul.mubr.bf16.vlgmr.msra.gmra.mrb[48].mxu0 %v1882_v28  ;;  %v1811_v28 = vadd.f32 %v5050_v12, %v1510_v23  ;;  %v4007_v12 = vld [vmem:[%s5324_s11 + $0x2f0] ss:$8 sps:$4 sm:$0xff]  }
 0x70b   :  { %v4059_v46 = vld [vmem:[#allocation11] sm:$0xff]  }
 0x70c   :  { %vm1862_vm10 = vcmp.gt.f32.partialorder %v1811_v28, 0.0 }
 0x710   :  { %v1769_v36 = vpop.f32.mrb[40].mxu0 }
 0x711   :  { %v1770_v37 = vadd.f32 %v1769_v36, %v1502_v33  ;;  %v1771_v27 = vpop.f32.mrb[41].mxu0  ;;  %v1870_v33 = vmul.f32 0.01, %v1811_v28 }
 0x712   :  { %v1772_v40 = vadd.f32 %v1771_v27, %v1506_v35  ;;  %v1773_v29 = vpop.f32.mrb[42].mxu0  ;;  %v4012_v35 = vld [vmem:[%s5324_s11 + $0x304] ss:$8 sps:$4 sm:$0xff]   ;;  %v4010_v27 = vld [vmem:[%s5324_s11 + $0x300] ss:$8 sps:$4 sm:$0xff]  }
 0x713   :  { %vm1860_vm8 = vcmp.gt.f32.partialorder %v1770_v37, 0.0  ;;  %v1868_v41 = vmul.f32 0.01, %v1770_v37  ;;  %v1774_v42 = vpop.f32.mrb[43].mxu0  ;;  %v1878_v36 = vsel %vm1862_vm10, %v1811_v28, %v1870_v33 }
 0x714   :  { %vm1861_vm9 = vcmp.gt.f32.partialorder %v1772_v40, 0.0  ;;  %v1869_v43 = vmul.f32 0.01, %v1772_v40  ;;  %v1886_v39 = vpack.c.bf16 %v1878_v36, %v1878_v36  ;;  %v4018_v42 = vld [vmem:[%s5324_s11 + $0x324] ss:$8 sps:$4 sm:$0xff]  }
 0x715   :  { %v1876_v44 = vsel %vm1860_vm8, %v1770_v37, %v1868_v41  ;;  %v4013_v41 = vld [vmem:[%s5324_s11 + $0x310] ss:$8 sps:$4 sm:$0xff]   ;;  %v4073_v36 = vld [vmem:[#allocation11 + $0x38] sm:$0xff]  }
 0x716   :  { %v1877_v45 = vsel %vm1861_vm9, %v1772_v40, %v1869_v43  ;;  %v1884_v48 = vpack.c.bf16 %v1876_v44, %v1876_v44  ;;  %v4015_v40 = vld [vmem:[%s5324_s11 + $0x314] ss:$8 sps:$4 sm:$0xff]   ;;  %v4016_v43 = vld [vmem:[%s5324_s11 + $0x320] ss:$8 sps:$4 sm:$0xff]  }
 0x717   :  { %v1885_v38 = vpack.c.bf16 %v1877_v45, %v1877_v45  ;;  %v4021_v44 = vld [vmem:[%s5324_s11 + $0x334] ss:$8 sps:$4 sm:$0xff]  }
 0x718   :  { %v4058_v45 = vld [vmem:[#allocation11 + $0x40] sm:$0xff]  }
 0x719   :  { %2743 = vmatprep.mubr.bf16.mxu1 %v1885_v38  ;;  %v4060_v38 = vld [vmem:[#allocation11 + $0x48] sm:$0xff]   ;;  %3488 = vmatprep.subr.bf16.mxu0 %v4058_v45 }
 0x71a   :  { %2744 = vmatmul.mubr.bf16.vlgmr.msra.gmra.mrb[24].mxu1 %v1884_v48  ;;  %3489 = vmatpush3.bf16.msra.mxu0 %v4059_v46  ;;  %v4061_v48 = vld [vmem:[#allocation11 + $0x8] sm:$0xff]  }
 0x71b   :  { %2753 = vmatpush1.bf16.msra.mxu1 %v3962_v47  ;;  %2784 = vmatprep.mubr.bf16.mxu1 %v1887_v50  ;;  %v4019_v47 = vld [vmem:[%s5324_s11 + $0x330] ss:$8 sps:$4 sm:$0xff]   ;;  %v4062_v50 = vld [vmem:[#allocation11 + $0x50] sm:$0xff]  }
 0x71c   :  { %2754 = vmatprep.subr.bf16.mxu1 %v3967_v49  ;;  %v4024_v49 = vld [vmem:[%s5324_s11 + $0x344] ss:$8 sps:$4 sm:$0xff]   ;;  %3490 = vmatprep.subr.bf16.mxu0 %v4060_v38 }
 0x71e   :  { %3491 = vmatpush3.bf16.msra.mxu0 %v4061_v48 }
 0x71f   :  { %2755 = vmatpush1.bf16.msra.mxu1 %v3965_v51  ;;  %v4022_v51 = vld [vmem:[%s5324_s11 + $0x340] ss:$8 sps:$4 sm:$0xff]   ;;  %3492 = vmatprep.subr.bf16.mxu0 %v4062_v50 }
 0x720   :  { %v5073_v54 = vpop.f32.mrb[44].mxu0  ;;  %2756 = vmatprep.subr.bf16.mxu1 %v3970_v52  ;;  %v4063_v52 = vld [vmem:[#allocation11 + $0x10] sm:$0xff]  }
 0x721   :  { %v1853_v56 = vpop.f32.mrb[45].mxu0 }
 0x722   :  { %v1855_v57 = vpop.f32.mrb[46].mxu0  ;;  %v1854_v30 = vadd.f32 %v1853_v56, %v1522_v24  ;;  %v4025_v56 = vld [vmem:[%s5324_s11 + $0x350] ss:$8 sps:$4 sm:$0xff]   ;;  %3493 = vmatpush3.bf16.msra.mxu0 %v4063_v52  ;;  %v4052_v24 = vld [vmem:[%s5324_s11 + $0x3e0] ss:$8 sps:$4 sm:$0xff]  }
 0x723   :  { %2757 = vmatpush1.bf16.msra.mxu1 %v3968_v53  ;;  %v1856_v58 = vpop.f32.mrb[47].mxu0  ;;  %v4027_v53 = vld [vmem:[%s5324_s11 + $0x354] ss:$8 sps:$4 sm:$0xff]   ;;  %v4065_v57 = vld [vmem:[#allocation11 + $0x18] sm:$0xff]  }
 0x724   :  { %2758 = vmatprep.subr.bf16.mxu1 %v3973_v55  ;;  %v1873_v34 = vmul.f32 0.01, %v1854_v30  ;;  %vm1865_vm11 = vcmp.gt.f32.partialorder %v1854_v30, 0.0  ;;  %v4064_v55 = vld [vmem:[#allocation11 + $0x58] sm:$0xff]   ;;  %v4077_v52 = vld [vmem:[%s5328_s15 + $0x18] sm:$0xff]  }
 0x725   :  { %v4030_v58 = vld [vmem:[%s5324_s11 + $0x364] ss:$8 sps:$4 sm:$0xff]   ;;  %3494 = vmatprep.subr.bf16.mxu0 %v4064_v55 }
 0x726   :  { %v1881_v37 = vsel %vm1865_vm11, %v1854_v30, %v1873_v34  ;;  %3495 = vmatpush3.bf16.msra.mxu0 %v4065_v57  ;;  %v4070_v34 = vld [vmem:[#allocation11 + $0x70] sm:$0xff]   ;;  %v4079_v55 = vld [vmem:[%s5328_s15 + $0x28] sm:$0xff]  }
 0x727   :  { %2759 = vmatpush1.bf16.msra.mxu1 %v3971_v59  ;;  %v1889_v29 = vpack.c.bf16 %v1881_v37, %v1881_v37  ;;  %v4066_v59 = vld [vmem:[#allocation11 + $0x60] sm:$0xff]   ;;  %v2018_v37 = vld [vmem:[%s5325_s12] sm:$0x3]  ;;  %v4081_v57 = vld [vmem:[%s5328_s15 + $0x38] sm:$0xff]  }
 0x728   :  { %2760 = vmatprep.subr.bf16.mxu1 %v3976_v60  ;;  %v4028_v60 = vld [vmem:[%s5324_s11 + $0x360] ss:$8 sps:$4 sm:$0xff]   ;;  %3496 = vmatprep.subr.bf16.mxu0 %v4066_v59  ;;  %v3367_v59 = vld [vmem:[#allocation13] ss:$0 sm:$0xff] }
 0x72b   :  { %2761 = vmatpush1.bf16.msra.mxu1 %v3974_v61  ;;  %v4067_v61 = vld [vmem:[#allocation11 + $0x20] sm:$0xff]  }
 0x72c   :  { %2762 = vmatprep.subr.bf16.mxu1 %v3979_v62  ;;  %v4033_v62 = vld [vmem:[%s5324_s11 + $0x374] ss:$8 sps:$4 sm:$0xff]   ;;  %3497 = vmatpush3.bf16.msra.mxu0 %v4067_v61 }
 0x72f   :  { %2763 = vmatpush1.bf16.msra.mxu1 %v3977_v63  ;;  %v4068_v63 = vld [vmem:[#allocation11 + $0x68] sm:$0xff]  }
 0x730   :  { %2764 = vmatprep.subr.bf16.mxu1 %v3982_v1  ;;  %v4031_v1 = vld [vmem:[%s5324_s11 + $0x370] ss:$8 sps:$4 sm:$0xff]   ;;  %3498 = vmatprep.subr.bf16.mxu0 %v4068_v63 }
 0x733   :  { %2765 = vmatpush1.bf16.msra.mxu1 %v3980_v2  ;;  %v4069_v2 = vld [vmem:[#allocation11 + $0x28] sm:$0xff]  }
 0x734   :  { %2766 = vmatprep.subr.bf16.mxu1 %v3985_v3  ;;  %v4036_v3 = vld [vmem:[%s5324_s11 + $0x384] ss:$8 sps:$4 sm:$0xff]   ;;  %3499 = vmatpush3.bf16.msra.mxu0 %v4069_v2 }
 0x735   :  { %3500 = vmatprep.subr.bf16.mxu0 %v4070_v34 }
 0x737   :  { %2767 = vmatpush1.bf16.msra.mxu1 %v3983_v4  ;;  %v4034_v4 = vld [vmem:[%s5324_s11 + $0x380] ss:$8 sps:$4 sm:$0xff]  }
 0x738   :  { %2768 = vmatprep.subr.bf16.mxu1 %v3988_v9  ;;  %v4039_v9 = vld [vmem:[%s5324_s11 + $0x394] ss:$8 sps:$4 sm:$0xff]  }
 0x73b   :  { %2769 = vmatpush1.bf16.msra.mxu1 %v3986_v10  ;;  %v4037_v10 = vld [vmem:[%s5324_s11 + $0x390] ss:$8 sps:$4 sm:$0xff]  }
 0x73c   :  { %2770 = vmatprep.subr.bf16.mxu1 %v3991_v11  ;;  %v4042_v11 = vld [vmem:[%s5324_s11 + $0x3a4] ss:$8 sps:$4 sm:$0xff]  }
 0x73f   :  { %2771 = vmatpush1.bf16.msra.mxu1 %v3989_v13  ;;  %v4040_v13 = vld [vmem:[%s5324_s11 + $0x3a0] ss:$8 sps:$4 sm:$0xff]  }
 0x740   :  { %2772 = vmatprep.subr.bf16.mxu1 %v3994_v14  ;;  %v4045_v14 = vld [vmem:[%s5324_s11 + $0x3b4] ss:$8 sps:$4 sm:$0xff]  }
 0x743   :  { %2773 = vmatpush1.bf16.msra.mxu1 %v3992_v15  ;;  %v4043_v15 = vld [vmem:[%s5324_s11 + $0x3b0] ss:$8 sps:$4 sm:$0xff]  }
 0x744   :  { %2774 = vmatprep.subr.bf16.mxu1 %v3997_v16  ;;  %v4048_v16 = vld [vmem:[%s5324_s11 + $0x3c4] ss:$8 sps:$4 sm:$0xff]  }
 0x747   :  { %2775 = vmatpush1.bf16.msra.mxu1 %v3995_v17  ;;  %v1517_v17 = vsub.s32 6, %v5038_v5  ;;  %v4074_v5 = vld [vmem:[%s5328_s15] sm:$0xff]  }
 0x748   :  { %2776 = vmatprep.subr.bf16.mxu1 %v4000_v18  ;;  %v4046_v18 = vld [vmem:[%s5324_s11 + $0x3c0] ss:$8 sps:$4 sm:$0xff]  }
 0x749   :  { %v1518_v20 = vrot.slane %v5041_v7, %v1517_v17  ;;  %v4057_v7 = vld [vmem:[%s5324_s11 + $0x3f4] ss:$8 sps:$4 sm:$0xff]  }
 0x74b   :  { %2777 = vmatpush1.bf16.msra.mxu1 %v3998_v21  ;;  %v4049_v21 = vld [vmem:[%s5324_s11 + $0x3d0] ss:$8 sps:$4 sm:$0xff]   ;;  %v1852_v23 = vadd.f32 %v5073_v54, %v1518_v20 }
 0x74c   :  { %2778 = vmatprep.subr.bf16.mxu1 %v4003_v22  ;;  %v4054_v22 = vld [vmem:[%s5324_s11 + $0x3e4] ss:$8 sps:$4 sm:$0xff]  }
 0x74d   :  { %vm1864_vm12 = vcmp.gt.f32.partialorder %v1852_v23, 0.0 }
 0x74f   :  { %2779 = vmatpush1.bf16.msra.mxu1 %v4001_v25  ;;  %v1872_v25 = vmul.f32 0.01, %v1852_v23 }
 0x750   :  { %2780 = vmatprep.subr.bf16.mxu1 %v4006_v26  ;;  %v4055_v26 = vld [vmem:[%s5324_s11 + $0x3f0] ss:$8 sps:$4 sm:$0xff]  }
 0x751   :  { %v1880_v28 = vsel %vm1864_vm12, %v1852_v23, %v1872_v25 }
 0x752   :  { %v1888_v54 = vpack.c.bf16 %v1880_v28, %v1880_v28 }
 0x753   :  { %2781 = vmatpush1.bf16.msra.mxu1 %v4004_v31 }
 0x754   :  { %2782 = vmatprep.subr.bf16.mxu1 %v4009_v32 }
 0x757   :  { %2783 = vmatpush1.bf16.msra.mxu1 %v4007_v12  ;;  %v4071_v12 = vld [vmem:[#allocation11 + $0x30] sm:$0xff]  }
 0x758   :  { %2793 = vmatprep.subr.bf16.mxu1 %v4012_v35  ;;  %3501 = vmatpush3.bf16.msra.mxu0 %v4071_v12  ;;  %v4072_v35 = vld [vmem:[#allocation11 + $0x78] sm:$0xff]  }
 0x759   :  { %3502 = vmatprep.subr.bf16.mxu0 %v4072_v35 }
 0x75a   :  { %2785 = vmatmul.mubr.bf16.vlgmr.msra.gmra.mrb[24].mxu1 %v1886_v39  ;;  %v2027_v39 = vrot.slane %v2018_v37, %v1497_v8  ;;  %v4075_v8 = vld [vmem:[%s5328_s15 + $0x8] sm:$0xff]  }
 0x75b   :  { %2794 = vmatpush1.bf16.msra.mxu1 %v4010_v27  ;;  %2825 = vmatprep.mubr.bf16.mxu1 %v1889_v29  ;;  %v2023_v27 = vrot.slane %v2018_v37, %v1493_v6 }
 0x75c   :  { %2795 = vmatprep.subr.bf16.mxu1 %v4015_v40  ;;  %3503 = vmatpush3.bf16.msra.mxu0 %v4073_v36 }
 0x75d   :  { %3717 = vmatprep.subr.bf16.mxu0 %v4279_v0 }
 0x75f   :  { %2796 = vmatpush1.bf16.msra.mxu1 %v4013_v41 }
 0x760   :  { %2797 = vmatprep.subr.bf16.mxu1 %v4018_v42 }
 0x763   :  { %2798 = vmatpush1.bf16.msra.mxu1 %v4016_v43 }
 0x764   :  { %2799 = vmatprep.subr.bf16.mxu1 %v4021_v44 }
 0x767   :  { %2800 = vmatpush1.bf16.msra.mxu1 %v4019_v47 }
 0x768   :  { %2801 = vmatprep.subr.bf16.mxu1 %v4024_v49 }
 0x76b   :  { %2802 = vmatpush1.bf16.msra.mxu1 %v4022_v51  ;;  %v4076_v51 = vld [vmem:[%s5328_s15 + $0x10] sm:$0xff]  }
 0x76c   :  { %2803 = vmatprep.subr.bf16.mxu1 %v4027_v53  ;;  %v4078_v53 = vld [vmem:[%s5328_s15 + $0x20] sm:$0xff]  }
 0x76f   :  { %2804 = vmatpush1.bf16.msra.mxu1 %v4025_v56  ;;  %v4080_v56 = vld [vmem:[%s5328_s15 + $0x30] sm:$0xff]   ;;  %s4236_s15 = scalar_lea.vmem %s3140_s22, 32 }
 0x770   :  { %2805 = vmatprep.subr.bf16.mxu1 %v4030_v58  ;;  %p4237_p0 = scmp.ne.s32.totalorder %s3140_s22, %s4236_s15  ;;  %p4242_p2 = scmp.lt.s32.totalorder %s4236_s15, %s4236_s15 }
 0x772   :  { %p4243_p3 = por %p4242_p2, %p4241_p1 }
 0x773   :  { %2806 = vmatpush1.bf16.msra.mxu1 %v4028_v60 }
 0x774   :  { %2807 = vmatprep.subr.bf16.mxu1 %v4033_v62  ;;  %p4244_p4 = pnand %p4243_p3, %p4237_p0 }
 0x777   :  { %2808 = vmatpush1.bf16.msra.mxu1 %v4031_v1 }
 0x778   :  { %2809 = vmatprep.subr.bf16.mxu1 %v4036_v3 }
 0x77b   :  { %2810 = vmatpush1.bf16.msra.mxu1 %v4034_v4 }
 0x77c   :  { %2811 = vmatprep.subr.bf16.mxu1 %v4039_v9 }
 0x77f   :  { %2812 = vmatpush1.bf16.msra.mxu1 %v4037_v10 }
 0x780   :  { %2813 = vmatprep.subr.bf16.mxu1 %v4042_v11 }
 0x783   :  { %2814 = vmatpush1.bf16.msra.mxu1 %v4040_v13 }
 0x784   :  { %2815 = vmatprep.subr.bf16.mxu1 %v4045_v14 }
 0x787   :  { %2816 = vmatpush1.bf16.msra.mxu1 %v4043_v15 }
 0x788   :  { %2817 = vmatprep.subr.bf16.mxu1 %v4048_v16 }
 0x78b   :  { %2818 = vmatpush1.bf16.msra.mxu1 %v4046_v18 }
 0x78c   :  { %2819 = vmatprep.subr.bf16.mxu1 %v4051_v19 }
 0x78f   :  { %2820 = vmatpush1.bf16.msra.mxu1 %v4049_v21 }
 0x790   :  { %2821 = vmatprep.subr.bf16.mxu1 %v4054_v22 }
 0x793   :  { %2822 = vmatpush1.bf16.msra.mxu1 %v4052_v24 }
 0x794   :  { %2823 = vmatprep.subr.bf16.mxu1 %v4057_v7 }
 0x797   :  { %2824 = vmatpush1.bf16.msra.mxu1 %v4055_v26 }
 0x79a   :  { %2826 = vmatmul.mubr.bf16.vlgmr.msra.gmra.mrb[24].mxu1 %v1888_v54 }
 0x7dd   :  { %v2704_v30 = vpop.f32.mrb[48].mxu0 }
 0x7de   :  { %v2706_v31 = vpop.f32.mrb[49].mxu0  ;;  %v2705_v40 = vadd.f32 %v2704_v30, %v2023_v27 }
 0x7df   :  { %v2708_v32 = vpop.f32.mrb[50].mxu0  ;;  %v2707_v29 = vadd.f32 %v2706_v31, %v2027_v39 }
 0x7e0   :  { %v2709_v33 = vpop.f32.mrb[51].mxu0 }
 0x86d   :  { %v2827_v41 = vpop.f32.mrb[24].mxu1 }
 0x86e   :  { %v3834_v42 = vadd.f32 %v2827_v41, %v2705_v40  ;;  %v2829_v43 = vpop.f32.mrb[25].mxu1 }
 0x86f   :  { %v3836_v44 = vadd.f32 %v2829_v43, %v2707_v29  ;;  %v2831_v45 = vpop.f32.mrb[26].mxu1 }
 0x870   :  { %vm2834_vm13 = vcmp.gt.f32.partialorder %v3834_v42, 0.0  ;;  %v2836_v46 = vmul.f32 0.01, %v3834_v42  ;;  %v2832_v38 = vpop.f32.mrb[27].mxu1 }
 0x871   :  { %vm2835_vm14 = vcmp.gt.f32.partialorder %v3836_v44, 0.0  ;;  %v2837_v47 = vmul.f32 0.01, %v3836_v44 }
 0x872   :  { %v2838_v48 = vsel %vm2834_vm13, %v3834_v42, %v2836_v46 }
 0x873   :  { %v2839_v49 = vsel %vm2835_vm14, %v3836_v44, %v2837_v47  ;;  %v2840_v6 = vpack.c.bf16 %v2838_v48, %v2838_v48 }
 0x874   :  { %v2841_v50 = vpack.c.bf16 %v2839_v49, %v2839_v49 }
 0x876   :  { %3009 = vmatprep.mubr.bf16.mxu0 %v2841_v50 }
 0x877   :  { %3010 = vmatmul.mubr.bf16.vlgmr.msra.gmra.mrb[52].mxu0 %v2840_v6 }
 0x878   :  { %3718 = vmatpush3.bf16.msra.mxu0 %v4074_v5  ;;  %3733 = vmatprep.mubr.msk.bf16.mxu0 %vm4280_vm0, %v4279_v0 }
 0x879   :  { %3719 = vmatprep.subr.bf16.mxu0 %v4279_v0 }
 0x87c   :  { %3720 = vmatpush3.bf16.msra.mxu0 %v4075_v8 }
 0x87d   :  { %3721 = vmatprep.subr.bf16.mxu0 %v4279_v0 }
 0x880   :  { %3722 = vmatpush3.bf16.msra.mxu0 %v4076_v51 }
 0x881   :  { %3723 = vmatprep.subr.bf16.mxu0 %v4279_v0 }
 0x884   :  { %3724 = vmatpush3.bf16.msra.mxu0 %v4077_v52 }
 0x885   :  { %3725 = vmatprep.subr.bf16.mxu0 %v4279_v0 }
 0x888   :  { %3726 = vmatpush3.bf16.msra.mxu0 %v4078_v53 }
 0x889   :  { %3727 = vmatprep.subr.bf16.mxu0 %v4279_v0 }
 0x88c   :  { %3728 = vmatpush3.bf16.msra.mxu0 %v4079_v55 }
 0x88d   :  { %3729 = vmatprep.subr.bf16.mxu0 %v4279_v0 }
 0x890   :  { %3730 = vmatpush3.bf16.msra.mxu0 %v4080_v56 }
 0x891   :  { %3731 = vmatprep.subr.bf16.mxu0 %v4279_v0  ;;  %v3384_v0 = vld [vmem:[%s5329_s16] ss:$0 sm:$0xff] }
 0x894   :  { %3732 = vmatpush3.bf16.msra.mxu0 %v4081_v57 }
 0x94a   :  { %v3504_v58 = vpop.f32.mrb[52].mxu0 }
 0x94b   :  { %v3505_v60 = vpop.f32.mrb[53].mxu0 }
 0x94c   :  { %v3506_v61 = vadd.f32 %v3505_v60, %v3504_v58  ;;  %v3507_v62 = vpop.f32.mrb[54].mxu0 }
 0x94d   :  { %v3508_v63 = vpop.f32.mrb[55].mxu0 }
 0x94e   :  { %v3012_v1 = vadd.f32 %v3506_v61, %v3367_v59 }
 0x950   :  { %vm3017_vm0 = vcmp.gt.f32.partialorder %v3012_v1, 0.0  ;;  %v3018_v2 = vmul.f32 0.01, %v3012_v1 }
 0x952   :  { %v3019_v3 = vsel %vm3017_vm0, %v3012_v1, %v3018_v2 }
 0x953   :  { %v3020_v4 = vpack.c.bf16 %v3019_v3, %v3019_v3 }
 0x955   :  { %3734 = vmatmul.mubr.bf16.vlgmr.msra.gmra.mrb[56].mxu0 %v3020_v4 }
 0xa28   :  { %v3126_v9 = vpop.f32.mrb[56].mxu0 }
 0xa29   :  { %v3127_v10 = vadd.f32 %v3384_v0, %v3126_v9  ;;  %v3735_v11 = vpop.f32.mrb[57].mxu0 }
 0xa2a   :  { %v3129_v13 = vpop.f32.mrb[58].mxu0 }
 0xa2b   :  { %3132 = vst [vmem:[#allocation14] sm:$0x3] %v3127_v10  ;;  %v3736_v14 = vpop.f32.mrb[59].mxu0 }
 0xa2c   :  { %4247 = shalt.err (!%p4244_p4)
}
 0xa2d   :  { %s5338_s6 = sld [smem:[#allocation22_spill]] }
 0xa33   :  { %s4248_s16 = scalar_lea.hbm %s5338_s6, 32 }
 0xa34   :  { %p4249_p5 = scmp.ne.s32.totalorder %s5338_s6, %s4248_s16  ;;  %p4252_p6 = scmp.lt.u32.totalorder %s4248_s16, %s5338_s6 }
 0xa36   :  { %p4254_p7 = pnand %p4252_p6, %p4249_p5 }
 0xa38   :  { %4257 = shalt.err (!%p4254_p7)
}
 0xa39   :  { %3142 = dma.vmem_to_hbm [thread:$0]  %s3140_s22, 32, %s5338_s6, [#allocation4]  }
 0xa3a   :  { %4266 = dma.done.wait [#allocation4], 32  }
 0xa3b   :  { %4267 = vsyncadd [#allocation4], 4294967264 }
 0xa3c   :  { %3146 = vsyncpa [#allocation3], 1 }
 0xa3d   :  { %3147 = vsyncpa [#allocation6], 1 }
 0xa3e   :  { %3148 = vsyncpa [#allocation9], 1 }
 0xa3f   :  { %3149 = vsyncpa [#allocation12], 1 }
 0xa40   :  { %3150 = vsyncpa [#allocation4], 1 }

</bundles_post_ra>
